<compile_context>
chip_gen: v5e
topology: v5e:2x2
jax: 0.10.0
libtpu: 0.0.40
codegen_flags: <defaults>
</compile_context>

<pallas_src>
import functools

import jax
import jax.numpy as jnp
from jax import lax
from jax.experimental import pallas as pl
from jax.experimental.pallas import tpu as pltpu


def _round_up(x, m):
    return ((x + m - 1) // m) * m


# ----------------------------------------------------------------------------
# Fused Pallas kernel: L stacked LSTM layers (wavefront) + final Linear.
# ----------------------------------------------------------------------------
def _fused_lstm_fc_kernel(*refs, num_layers, hidden_dim, seq_len, batch,
                          fused_act):
    """Refs layout:
      refs[0]                : x_flat   (T*B, Din)   time-major, batch-padded
      refs[1 + 3l .. 3 + 3l] : per layer l: W_ih^T (Din_l, 4H), W_hh^T (H, 4H),
                               b (1, 4H)   (g-columns pre-scaled x2 if fused_act)
      refs[1+3L], refs[2+3L] : fc_w^T (H, Opad), fc_b (1, Opad)
      refs[3+3L]             : out      (B, Opad)
    """
    L, T, H, B = num_layers, seq_len, hidden_dim, batch
    x_ref = refs[0]
    w_refs = refs[1:1 + 3 * L]
    fcw_ref = refs[1 + 3 * L]
    fcb_ref = refs[2 + 3 * L]
    out_ref = refs[3 + 3 * L]

    # Small weights loaded once into values (vregs); the recurrent W_hh RHS is
    # identical every step so the compiler can keep it MXU weight-stationary.
    w_ih = [w_refs[3 * l + 0][...] for l in range(L)]
    w_hh = [w_refs[3 * l + 1][...] for l in range(L)]
    bias = [w_refs[3 * l + 2][...] for l in range(L)]

    # --- Hoisted layer-0 input projection + bias: ONE big MXU matmul, kept as
    #     a value (no VMEM scratch round-trip).  Shape (T*B, 4H).
    xproj0 = (jnp.dot(x_ref[...], w_ih[0],
                      preferred_element_type=jnp.float32) + bias[0])

    def cell(gates, c_prev):
        if fused_act:
            # One full-width (B, 4H=128-lane) sigmoid; g-gate pre-activations
            # were pre-scaled by 2, so tanh(x) = 2*sigmoid(2x) - 1.
            s = jax.nn.sigmoid(gates)
            i_g = s[:, 0 * H:1 * H]
            f_g = s[:, 1 * H:2 * H]
            g_g = 2.0 * s[:, 2 * H:3 * H] - 1.0
            o_g = s[:, 3 * H:4 * H]
        else:
            i_g = jax.nn.sigmoid(gates[:, 0 * H:1 * H])
            f_g = jax.nn.sigmoid(gates[:, 1 * H:2 * H])
            g_g = jnp.tanh(gates[:, 2 * H:3 * H])
            o_g = jax.nn.sigmoid(gates[:, 3 * H:4 * H])
        c_new = f_g * c_prev + i_g * g_g
        h_new = o_g * jnp.tanh(c_new)
        return h_new, c_new

    zeros = jnp.zeros((B, H), jnp.float32)
    h_prev = [zeros] * L        # h_{l, t-1}
    c_prev = [zeros] * L        # c_{l, t-1}
    h_seq = [[None] * T for _ in range(L)]   # h_{l, t}, kept in vregs

    # --- Wavefront: at macro-step s, layer l processes timestep t = s - l.
    #     Every input of a cell at macro-step s was produced at macro-step
    #     s-1, so the L cells inside a macro-step are mutually independent
    #     (overlappable matmuls) and the serial chain is T+L-1, not L*T.
    for s in range(T + L - 1):
        updates = []
        for l in range(L):
            t = s - l
            if t < 0 or t >= T:
                continue
            if l == 0:
                gates = xproj0[t * B:(t + 1) * B, :] + jnp.dot(
                    h_prev[0], w_hh[0], preferred_element_type=jnp.float32)
            else:
                gates = (jnp.dot(h_seq[l - 1][t], w_ih[l],
                                 preferred_element_type=jnp.float32)
                         + jnp.dot(h_prev[l], w_hh[l],
                                   preferred_element_type=jnp.float32)
                         + bias[l])
            h_new, c_new = cell(gates, c_prev[l])
            h_seq[l][t] = h_new
            updates.append((l, h_new, c_new))
        for l, h_new, c_new in updates:   # commit after the whole macro-step
            h_prev[l] = h_new
            c_prev[l] = c_new

    # Final Linear on the last timestep's hidden state of the top layer
    # (lane-dense padded output: one full-vreg store).
    h_last = h_seq[L - 1][T - 1]
    out_ref[...] = (jnp.dot(h_last, fcw_ref[...],
                            preferred_element_type=jnp.float32) + fcb_ref[...])


# ----------------------------------------------------------------------------
# Wrapper: pad B to a sublane tile, O to a lane tile, pre-scale g-gate columns
# for the single-pass activation, call the fused kernel, slice padding off.
# ----------------------------------------------------------------------------
def lstm_model_forward(x_btd, params, *, fuse_gate_activations=True):
    """Equivalent of LSTMModel.forward.  x_btd: (B, T, input_dim) -> (B, output_dim)."""
    H = params["hidden_dim"]
    lstm_layers = params["lstm"]
    L = len(lstm_layers)
    B, T, _ = x_btd.shape
    O = params["fc_w_t"].shape[1]

    B_pad = _round_up(max(B, 8), 8)       # full sublane tile
    O_pad = _round_up(max(O, 128), 128)   # lane-dense output store

    # Time-major, batch padded, flattened to (T*B_pad, Din) so the kernel's
    # hoisted projection needs no in-kernel reshape.
    x = jnp.transpose(x_btd, (1, 0, 2))
    if B_pad != B:
        x = jnp.pad(x, ((0, 0), (0, B_pad - B), (0, 0)))
    x = x.reshape(T * B_pad, x.shape[-1])

    def scale_g(w4h):
        # Multiply the g-gate columns (2H:3H of the 4H axis) by 2 so the
        # kernel can use a single sigmoid pass (tanh(x) = 2*sigmoid(2x) - 1).
        if not fuse_gate_activations:
            return w4h
        return w4h.at[..., 2 * H:3 * H].multiply(2.0)

    flat_w = []
    for (w_ih_t, w_hh_t, b) in lstm_layers:
        flat_w += [scale_g(w_ih_t), scale_g(w_hh_t), scale_g(b)]

    fc_w = params["fc_w_t"]
    fc_b = params["fc_b"]
    if O_pad != O:
        fc_w = jnp.pad(fc_w, ((0, 0), (0, O_pad - O)))
        fc_b = jnp.pad(fc_b, ((0, 0), (0, O_pad - O)))

    kernel = functools.partial(
        _fused_lstm_fc_kernel, num_layers=L, hidden_dim=H, seq_len=T,
        batch=B_pad, fused_act=fuse_gate_activations)
    n_inputs = 1 + 3 * L + 2

    out = pl.pallas_call(
        kernel,
        out_shape=jax.ShapeDtypeStruct((B_pad, O_pad), jnp.float32),
        in_specs=[pl.BlockSpec(memory_space=pltpu.MemorySpace.VMEM)] * n_inputs,
        out_specs=pl.BlockSpec(memory_space=pltpu.MemorySpace.VMEM),
        compiler_params=pltpu.CompilerParams(
            # Actual resident footprint is <1 MiB; keep the cap well under the
            # v7x 64 MiB physical VMEM so the same build is safe everywhere.
            vmem_limit_bytes=8 * 1024 * 1024),
    )(x, *flat_w, fc_w, fc_b)

    return out[:B, :O]


# ----------------------------------------------------------------------------
# Deterministic parameter init (PyTorch-style uniform(-1/sqrt(H), 1/sqrt(H)))
# ----------------------------------------------------------------------------
def init_params(key, input_dim, hidden_dim, layer_dim, output_dim):
    scale = 1.0 / jnp.sqrt(hidden_dim)
    layers = []
    for l in range(layer_dim):
        din = input_dim if l == 0 else hidden_dim
        key, k1, k2, k3, k4 = jax.random.split(key, 5)
        w_ih = jax.random.uniform(k1, (4 * hidden_dim, din), jnp.float32,
                                  -scale, scale)
        w_hh = jax.random.uniform(k2, (4 * hidden_dim, hidden_dim), jnp.float32,
                                  -scale, scale)
        b_ih = jax.random.uniform(k3, (4 * hidden_dim,), jnp.float32, -scale, scale)
        b_hh = jax.random.uniform(k4, (4 * hidden_dim,), jnp.float32, -scale, scale)
        layers.append((w_ih.T, w_hh.T, (b_ih + b_hh)[None, :]))
    key, k5, k6 = jax.random.split(key, 3)
    fc_scale = 1.0 / jnp.sqrt(hidden_dim)
    fc_w = jax.random.uniform(k5, (output_dim, hidden_dim), jnp.float32,
                              -fc_scale, fc_scale)
    fc_b = jax.random.uniform(k6, (output_dim,), jnp.float32, -fc_scale, fc_scale)
    return {"lstm": layers, "fc_w_t": fc_w.T, "fc_b": fc_b[None, :],
            "hidden_dim": hidden_dim}


# ----------------------------------------------------------------------------
# Pure-JAX reference (same math, lax.scan) for a correctness check
# ----------------------------------------------------------------------------
def reference_forward(x_btd, params):
    H = params["hidden_dim"]
    B = x_btd.shape[0]
    seq = jnp.transpose(x_btd, (1, 0, 2))
    for (w_ih_t, w_hh_t, b) in params["lstm"]:
        def step(carry, x_t):
            h, c = carry
            gates = x_t @ w_ih_t + h @ w_hh_t + b
            i_g = jax.nn.sigmoid(gates[:, 0 * H:1 * H])
            f_g = jax.nn.sigmoid(gates[:, 1 * H:2 * H])
            g_g = jnp.tanh(gates[:, 2 * H:3 * H])
            o_g = jax.nn.sigmoid(gates[:, 3 * H:4 * H])
            c_new = f_g * c + i_g * g_g
            h_new = o_g * jnp.tanh(c_new)
            return (h_new, c_new), h_new
        init = (jnp.zeros((B, H), jnp.float32), jnp.zeros((B, H), jnp.float32))
        _, seq = lax.scan(step, init, seq)
    return seq[-1] @ params["fc_w_t"] + params["fc_b"]


# ----------------------------------------------------------------------------
if __name__ == "__main__":
    # Small shapes consistent with the module: batch=2, seq=8, input_dim=16,
    # hidden_dim=32, layer_dim=2, output_dim=10.
    B, T, D, H, L, O = 2, 8, 16, 32, 2, 10

    key = jax.random.PRNGKey(0)
    key, pkey, xkey = jax.random.split(key, 3)
    params = init_params(pkey, D, H, L, O)
    x = jax.random.normal(xkey, (B, T, D), jnp.float32)

    out = jax.block_until_ready(lstm_model_forward(x, params))
    ref = jax.block_until_ready(reference_forward(x, params))

    assert out.shape == (B, O), out.shape
    assert jnp.allclose(out, ref, atol=1e-4, rtol=1e-4), (
        f"max abs err {jnp.max(jnp.abs(out - ref))}")
    print("KERNEL_OK")
</pallas_src>

<mosaic_0001>
module attributes {stable_mosaic.version = 11 : i64} {
  func.func @_fused_lstm_fc_kernel(%arg0: memref<64x16xf32, #tpu.memory_space<vmem>>, %arg1: memref<16x128xf32, #tpu.memory_space<vmem>>, %arg2: memref<32x128xf32, #tpu.memory_space<vmem>>, %arg3: memref<1x128xf32, #tpu.memory_space<vmem>>, %arg4: memref<32x128xf32, #tpu.memory_space<vmem>>, %arg5: memref<32x128xf32, #tpu.memory_space<vmem>>, %arg6: memref<1x128xf32, #tpu.memory_space<vmem>>, %arg7: memref<32x128xf32, #tpu.memory_space<vmem>>, %arg8: memref<1x128xf32, #tpu.memory_space<vmem>>, %arg9: memref<8x128xf32, #tpu.memory_space<vmem>>) attributes {dimension_semantics = [], scalar_prefetch = 0 : i64, scratch_operands = 0 : i64, tpu.core_type = #tpu.core_type<tc>} {
    %c0 = arith.constant 0 : index
    %c0_0 = arith.constant 0 : index
    %0 = vector.load %arg1[%c0, %c0_0] : memref<16x128xf32, #tpu.memory_space<vmem>>, vector<16x128xf32>
    %c0_1 = arith.constant 0 : index
    %c0_2 = arith.constant 0 : index
    %1 = vector.load %arg4[%c0_1, %c0_2] : memref<32x128xf32, #tpu.memory_space<vmem>>, vector<32x128xf32>
    %c0_3 = arith.constant 0 : index
    %c0_4 = arith.constant 0 : index
    %2 = vector.load %arg2[%c0_3, %c0_4] : memref<32x128xf32, #tpu.memory_space<vmem>>, vector<32x128xf32>
    %c0_5 = arith.constant 0 : index
    %c0_6 = arith.constant 0 : index
    %3 = vector.load %arg5[%c0_5, %c0_6] : memref<32x128xf32, #tpu.memory_space<vmem>>, vector<32x128xf32>
    %c0_7 = arith.constant 0 : index
    %c0_8 = arith.constant 0 : index
    %4 = vector.load %arg3[%c0_7, %c0_8] : memref<1x128xf32, #tpu.memory_space<vmem>>, vector<1x128xf32>
    %c0_9 = arith.constant 0 : index
    %c0_10 = arith.constant 0 : index
    %5 = vector.load %arg6[%c0_9, %c0_10] : memref<1x128xf32, #tpu.memory_space<vmem>>, vector<1x128xf32>
    %c0_11 = arith.constant 0 : index
    %c0_12 = arith.constant 0 : index
    %6 = vector.load %arg0[%c0_11, %c0_12] : memref<64x16xf32, #tpu.memory_space<vmem>>, vector<64x16xf32>
    %cst = arith.constant dense<0.000000e+00> : vector<64x128xf32>
    %7 = tpu.matmul %6, %0, %cst {dimension_numbers = #tpu.dot_dimension_numbers<[1], [0], [0], [1], [0, 0, 1, 1], [], []>} : vector<64x16xf32>, vector<16x128xf32>, vector<64x128xf32> -> vector<64x128xf32>
    %8 = vector.broadcast %4 : vector<1x128xf32> to vector<64x128xf32>
    %9 = arith.addf %7, %8 : vector<64x128xf32>
    %cst_13 = arith.constant 0.000000e+00 : f32
    %10 = vector.broadcast %cst_13 : f32 to vector<8x32xf32>
    %11 = vector.extract_strided_slice %9 {offsets = [0, 0], sizes = [8, 128], strides = [1, 1]} : vector<64x128xf32> to vector<8x128xf32>
    %cst_14 = arith.constant dense<0.000000e+00> : vector<8x128xf32>
    %12 = tpu.matmul %10, %2, %cst_14 {dimension_numbers = #tpu.dot_dimension_numbers<[1], [0], [0], [1], [0, 0, 1, 1], [], []>} : vector<8x32xf32>, vector<32x128xf32>, vector<8x128xf32> -> vector<8x128xf32>
    %13 = arith.addf %11, %12 : vector<8x128xf32>
    %14 = arith.negf %13 : vector<8x128xf32>
    %15 = math.exp %14 : vector<8x128xf32>
    %cst_15 = arith.constant 1.000000e+00 : f32
    %16 = vector.broadcast %cst_15 : f32 to vector<8x128xf32>
    %17 = arith.addf %16, %15 : vector<8x128xf32>
    %18 = arith.divf %16, %17 : vector<8x128xf32>
    %19 = vector.extract_strided_slice %18 {offsets = [0, 0], sizes = [8, 32], strides = [1, 1]} : vector<8x128xf32> to vector<8x32xf32>
    %20 = vector.extract_strided_slice %18 {offsets = [0, 32], sizes = [8, 32], strides = [1, 1]} : vector<8x128xf32> to vector<8x32xf32>
    %21 = vector.extract_strided_slice %18 {offsets = [0, 64], sizes = [8, 32], strides = [1, 1]} : vector<8x128xf32> to vector<8x32xf32>
    %cst_16 = arith.constant 2.000000e+00 : f32
    %22 = vector.broadcast %cst_16 : f32 to vector<8x32xf32>
    %23 = arith.mulf %22, %21 : vector<8x32xf32>
    %cst_17 = arith.constant 1.000000e+00 : f32
    %24 = vector.broadcast %cst_17 : f32 to vector<8x32xf32>
    %25 = arith.subf %23, %24 : vector<8x32xf32>
    %26 = vector.extract_strided_slice %18 {offsets = [0, 96], sizes = [8, 32], strides = [1, 1]} : vector<8x128xf32> to vector<8x32xf32>
    %27 = arith.mulf %20, %10 : vector<8x32xf32>
    %28 = arith.mulf %19, %25 : vector<8x32xf32>
    %29 = arith.addf %27, %28 : vector<8x32xf32>
    %30 = math.tanh %29 : vector<8x32xf32>
    %31 = arith.mulf %26, %30 : vector<8x32xf32>
    %32 = vector.extract_strided_slice %9 {offsets = [8, 0], sizes = [8, 128], strides = [1, 1]} : vector<64x128xf32> to vector<8x128xf32>
    %cst_18 = arith.constant dense<0.000000e+00> : vector<8x128xf32>
    %33 = tpu.matmul %31, %2, %cst_18 {dimension_numbers = #tpu.dot_dimension_numbers<[1], [0], [0], [1], [0, 0, 1, 1], [], []>} : vector<8x32xf32>, vector<32x128xf32>, vector<8x128xf32> -> vector<8x128xf32>
    %34 = arith.addf %32, %33 : vector<8x128xf32>
    %35 = arith.negf %34 : vector<8x128xf32>
    %36 = math.exp %35 : vector<8x128xf32>
    %cst_19 = arith.constant 1.000000e+00 : f32
    %37 = vector.broadcast %cst_19 : f32 to vector<8x128xf32>
    %38 = arith.addf %37, %36 : vector<8x128xf32>
    %39 = arith.divf %37, %38 : vector<8x128xf32>
    %40 = vector.extract_strided_slice %39 {offsets = [0, 0], sizes = [8, 32], strides = [1, 1]} : vector<8x128xf32> to vector<8x32xf32>
    %41 = vector.extract_strided_slice %39 {offsets = [0, 32], sizes = [8, 32], strides = [1, 1]} : vector<8x128xf32> to vector<8x32xf32>
    %42 = vector.extract_strided_slice %39 {offsets = [0, 64], sizes = [8, 32], strides = [1, 1]} : vector<8x128xf32> to vector<8x32xf32>
    %cst_20 = arith.constant 2.000000e+00 : f32
    %43 = vector.broadcast %cst_20 : f32 to vector<8x32xf32>
    %44 = arith.mulf %43, %42 : vector<8x32xf32>
    %cst_21 = arith.constant 1.000000e+00 : f32
    %45 = vector.broadcast %cst_21 : f32 to vector<8x32xf32>
    %46 = arith.subf %44, %45 : vector<8x32xf32>
    %47 = vector.extract_strided_slice %39 {offsets = [0, 96], sizes = [8, 32], strides = [1, 1]} : vector<8x128xf32> to vector<8x32xf32>
    %48 = arith.mulf %41, %29 : vector<8x32xf32>
    %49 = arith.mulf %40, %46 : vector<8x32xf32>
    %50 = arith.addf %48, %49 : vector<8x32xf32>
    %51 = math.tanh %50 : vector<8x32xf32>
    %52 = arith.mulf %47, %51 : vector<8x32xf32>
    %cst_22 = arith.constant dense<0.000000e+00> : vector<8x128xf32>
    %53 = tpu.matmul %31, %1, %cst_22 {dimension_numbers = #tpu.dot_dimension_numbers<[1], [0], [0], [1], [0, 0, 1, 1], [], []>} : vector<8x32xf32>, vector<32x128xf32>, vector<8x128xf32> -> vector<8x128xf32>
    %cst_23 = arith.constant dense<0.000000e+00> : vector<8x128xf32>
    %54 = tpu.matmul %10, %3, %cst_23 {dimension_numbers = #tpu.dot_dimension_numbers<[1], [0], [0], [1], [0, 0, 1, 1], [], []>} : vector<8x32xf32>, vector<32x128xf32>, vector<8x128xf32> -> vector<8x128xf32>
    %55 = arith.addf %53, %54 : vector<8x128xf32>
    %56 = vector.broadcast %5 : vector<1x128xf32> to vector<8x128xf32>
    %57 = arith.addf %55, %56 : vector<8x128xf32>
    %58 = arith.negf %57 : vector<8x128xf32>
    %59 = math.exp %58 : vector<8x128xf32>
    %cst_24 = arith.constant 1.000000e+00 : f32
    %60 = vector.broadcast %cst_24 : f32 to vector<8x128xf32>
    %61 = arith.addf %60, %59 : vector<8x128xf32>
    %62 = arith.divf %60, %61 : vector<8x128xf32>
    %63 = vector.extract_strided_slice %62 {offsets = [0, 0], sizes = [8, 32], strides = [1, 1]} : vector<8x128xf32> to vector<8x32xf32>
    %64 = vector.extract_strided_slice %62 {offsets = [0, 32], sizes = [8, 32], strides = [1, 1]} : vector<8x128xf32> to vector<8x32xf32>
    %65 = vector.extract_strided_slice %62 {offsets = [0, 64], sizes = [8, 32], strides = [1, 1]} : vector<8x128xf32> to vector<8x32xf32>
    %cst_25 = arith.constant 2.000000e+00 : f32
    %66 = vector.broadcast %cst_25 : f32 to vector<8x32xf32>
    %67 = arith.mulf %66, %65 : vector<8x32xf32>
    %cst_26 = arith.constant 1.000000e+00 : f32
    %68 = vector.broadcast %cst_26 : f32 to vector<8x32xf32>
    %69 = arith.subf %67, %68 : vector<8x32xf32>
    %70 = vector.extract_strided_slice %62 {offsets = [0, 96], sizes = [8, 32], strides = [1, 1]} : vector<8x128xf32> to vector<8x32xf32>
    %71 = arith.mulf %64, %10 : vector<8x32xf32>
    %72 = arith.mulf %63, %69 : vector<8x32xf32>
    %73 = arith.addf %71, %72 : vector<8x32xf32>
    %74 = math.tanh %73 : vector<8x32xf32>
    %75 = arith.mulf %70, %74 : vector<8x32xf32>
    %76 = vector.extract_strided_slice %9 {offsets = [16, 0], sizes = [8, 128], strides = [1, 1]} : vector<64x128xf32> to vector<8x128xf32>
    %cst_27 = arith.constant dense<0.000000e+00> : vector<8x128xf32>
    %77 = tpu.matmul %52, %2, %cst_27 {dimension_numbers = #tpu.dot_dimension_numbers<[1], [0], [0], [1], [0, 0, 1, 1], [], []>} : vector<8x32xf32>, vector<32x128xf32>, vector<8x128xf32> -> vector<8x128xf32>
    %78 = arith.addf %76, %77 : vector<8x128xf32>
    %79 = arith.negf %78 : vector<8x128xf32>
    %80 = math.exp %79 : vector<8x128xf32>
    %cst_28 = arith.constant 1.000000e+00 : f32
    %81 = vector.broadcast %cst_28 : f32 to vector<8x128xf32>
    %82 = arith.addf %81, %80 : vector<8x128xf32>
    %83 = arith.divf %81, %82 : vector<8x128xf32>
    %84 = vector.extract_strided_slice %83 {offsets = [0, 0], sizes = [8, 32], strides = [1, 1]} : vector<8x128xf32> to vector<8x32xf32>
    %85 = vector.extract_strided_slice %83 {offsets = [0, 32], sizes = [8, 32], strides = [1, 1]} : vector<8x128xf32> to vector<8x32xf32>
    %86 = vector.extract_strided_slice %83 {offsets = [0, 64], sizes = [8, 32], strides = [1, 1]} : vector<8x128xf32> to vector<8x32xf32>
    %cst_29 = arith.constant 2.000000e+00 : f32
    %87 = vector.broadcast %cst_29 : f32 to vector<8x32xf32>
    %88 = arith.mulf %87, %86 : vector<8x32xf32>
    %cst_30 = arith.constant 1.000000e+00 : f32
    %89 = vector.broadcast %cst_30 : f32 to vector<8x32xf32>
    %90 = arith.subf %88, %89 : vector<8x32xf32>
    %91 = vector.extract_strided_slice %83 {offsets = [0, 96], sizes = [8, 32], strides = [1, 1]} : vector<8x128xf32> to vector<8x32xf32>
    %92 = arith.mulf %85, %50 : vector<8x32xf32>
    %93 = arith.mulf %84, %90 : vector<8x32xf32>
    %94 = arith.addf %92, %93 : vector<8x32xf32>
    %95 = math.tanh %94 : vector<8x32xf32>
    %96 = arith.mulf %91, %95 : vector<8x32xf32>
    %cst_31 = arith.constant dense<0.000000e+00> : vector<8x128xf32>
    %97 = tpu.matmul %52, %1, %cst_31 {dimension_numbers = #tpu.dot_dimension_numbers<[1], [0], [0], [1], [0, 0, 1, 1], [], []>} : vector<8x32xf32>, vector<32x128xf32>, vector<8x128xf32> -> vector<8x128xf32>
    %cst_32 = arith.constant dense<0.000000e+00> : vector<8x128xf32>
    %98 = tpu.matmul %75, %3, %cst_32 {dimension_numbers = #tpu.dot_dimension_numbers<[1], [0], [0], [1], [0, 0, 1, 1], [], []>} : vector<8x32xf32>, vector<32x128xf32>, vector<8x128xf32> -> vector<8x128xf32>
    %99 = arith.addf %97, %98 : vector<8x128xf32>
    %100 = vector.broadcast %5 : vector<1x128xf32> to vector<8x128xf32>
    %101 = arith.addf %99, %100 : vector<8x128xf32>
    %102 = arith.negf %101 : vector<8x128xf32>
    %103 = math.exp %102 : vector<8x128xf32>
    %cst_33 = arith.constant 1.000000e+00 : f32
    %104 = vector.broadcast %cst_33 : f32 to vector<8x128xf32>
    %105 = arith.addf %104, %103 : vector<8x128xf32>
    %106 = arith.divf %104, %105 : vector<8x128xf32>
    %107 = vector.extract_strided_slice %106 {offsets = [0, 0], sizes = [8, 32], strides = [1, 1]} : vector<8x128xf32> to vector<8x32xf32>
    %108 = vector.extract_strided_slice %106 {offsets = [0, 32], sizes = [8, 32], strides = [1, 1]} : vector<8x128xf32> to vector<8x32xf32>
    %109 = vector.extract_strided_slice %106 {offsets = [0, 64], sizes = [8, 32], strides = [1, 1]} : vector<8x128xf32> to vector<8x32xf32>
    %cst_34 = arith.constant 2.000000e+00 : f32
    %110 = vector.broadcast %cst_34 : f32 to vector<8x32xf32>
    %111 = arith.mulf %110, %109 : vector<8x32xf32>
    %cst_35 = arith.constant 1.000000e+00 : f32
    %112 = vector.broadcast %cst_35 : f32 to vector<8x32xf32>
    %113 = arith.subf %111, %112 : vector<8x32xf32>
    %114 = vector.extract_strided_slice %106 {offsets = [0, 96], sizes = [8, 32], strides = [1, 1]} : vector<8x128xf32> to vector<8x32xf32>
    %115 = arith.mulf %108, %73 : vector<8x32xf32>
    %116 = arith.mulf %107, %113 : vector<8x32xf32>
    %117 = arith.addf %115, %116 : vector<8x32xf32>
    %118 = math.tanh %117 : vector<8x32xf32>
    %119 = arith.mulf %114, %118 : vector<8x32xf32>
    %120 = vector.extract_strided_slice %9 {offsets = [24, 0], sizes = [8, 128], strides = [1, 1]} : vector<64x128xf32> to vector<8x128xf32>
    %cst_36 = arith.constant dense<0.000000e+00> : vector<8x128xf32>
    %121 = tpu.matmul %96, %2, %cst_36 {dimension_numbers = #tpu.dot_dimension_numbers<[1], [0], [0], [1], [0, 0, 1, 1], [], []>} : vector<8x32xf32>, vector<32x128xf32>, vector<8x128xf32> -> vector<8x128xf32>
    %122 = arith.addf %120, %121 : vector<8x128xf32>
    %123 = arith.negf %122 : vector<8x128xf32>
    %124 = math.exp %123 : vector<8x128xf32>
    %cst_37 = arith.constant 1.000000e+00 : f32
    %125 = vector.broadcast %cst_37 : f32 to vector<8x128xf32>
    %126 = arith.addf %125, %124 : vector<8x128xf32>
    %127 = arith.divf %125, %126 : vector<8x128xf32>
    %128 = vector.extract_strided_slice %127 {offsets = [0, 0], sizes = [8, 32], strides = [1, 1]} : vector<8x128xf32> to vector<8x32xf32>
    %129 = vector.extract_strided_slice %127 {offsets = [0, 32], sizes = [8, 32], strides = [1, 1]} : vector<8x128xf32> to vector<8x32xf32>
    %130 = vector.extract_strided_slice %127 {offsets = [0, 64], sizes = [8, 32], strides = [1, 1]} : vector<8x128xf32> to vector<8x32xf32>
    %cst_38 = arith.constant 2.000000e+00 : f32
    %131 = vector.broadcast %cst_38 : f32 to vector<8x32xf32>
    %132 = arith.mulf %131, %130 : vector<8x32xf32>
    %cst_39 = arith.constant 1.000000e+00 : f32
    %133 = vector.broadcast %cst_39 : f32 to vector<8x32xf32>
    %134 = arith.subf %132, %133 : vector<8x32xf32>
    %135 = vector.extract_strided_slice %127 {offsets = [0, 96], sizes = [8, 32], strides = [1, 1]} : vector<8x128xf32> to vector<8x32xf32>
    %136 = arith.mulf %129, %94 : vector<8x32xf32>
    %137 = arith.mulf %128, %134 : vector<8x32xf32>
    %138 = arith.addf %136, %137 : vector<8x32xf32>
    %139 = math.tanh %138 : vector<8x32xf32>
    %140 = arith.mulf %135, %139 : vector<8x32xf32>
    %cst_40 = arith.constant dense<0.000000e+00> : vector<8x128xf32>
    %141 = tpu.matmul %96, %1, %cst_40 {dimension_numbers = #tpu.dot_dimension_numbers<[1], [0], [0], [1], [0, 0, 1, 1], [], []>} : vector<8x32xf32>, vector<32x128xf32>, vector<8x128xf32> -> vector<8x128xf32>
    %cst_41 = arith.constant dense<0.000000e+00> : vector<8x128xf32>
    %142 = tpu.matmul %119, %3, %cst_41 {dimension_numbers = #tpu.dot_dimension_numbers<[1], [0], [0], [1], [0, 0, 1, 1], [], []>} : vector<8x32xf32>, vector<32x128xf32>, vector<8x128xf32> -> vector<8x128xf32>
    %143 = arith.addf %141, %142 : vector<8x128xf32>
    %144 = vector.broadcast %5 : vector<1x128xf32> to vector<8x128xf32>
    %145 = arith.addf %143, %144 : vector<8x128xf32>
    %146 = arith.negf %145 : vector<8x128xf32>
    %147 = math.exp %146 : vector<8x128xf32>
    %cst_42 = arith.constant 1.000000e+00 : f32
    %148 = vector.broadcast %cst_42 : f32 to vector<8x128xf32>
    %149 = arith.addf %148, %147 : vector<8x128xf32>
    %150 = arith.divf %148, %149 : vector<8x128xf32>
    %151 = vector.extract_strided_slice %150 {offsets = [0, 0], sizes = [8, 32], strides = [1, 1]} : vector<8x128xf32> to vector<8x32xf32>
    %152 = vector.extract_strided_slice %150 {offsets = [0, 32], sizes = [8, 32], strides = [1, 1]} : vector<8x128xf32> to vector<8x32xf32>
    %153 = vector.extract_strided_slice %150 {offsets = [0, 64], sizes = [8, 32], strides = [1, 1]} : vector<8x128xf32> to vector<8x32xf32>
    %cst_43 = arith.constant 2.000000e+00 : f32
    %154 = vector.broadcast %cst_43 : f32 to vector<8x32xf32>
    %155 = arith.mulf %154, %153 : vector<8x32xf32>
    %cst_44 = arith.constant 1.000000e+00 : f32
    %156 = vector.broadcast %cst_44 : f32 to vector<8x32xf32>
    %157 = arith.subf %155, %156 : vector<8x32xf32>
    %158 = vector.extract_strided_slice %150 {offsets = [0, 96], sizes = [8, 32], strides = [1, 1]} : vector<8x128xf32> to vector<8x32xf32>
    %159 = arith.mulf %152, %117 : vector<8x32xf32>
    %160 = arith.mulf %151, %157 : vector<8x32xf32>
    %161 = arith.addf %159, %160 : vector<8x32xf32>
    %162 = math.tanh %161 : vector<8x32xf32>
    %163 = arith.mulf %158, %162 : vector<8x32xf32>
    %164 = vector.extract_strided_slice %9 {offsets = [32, 0], sizes = [8, 128], strides = [1, 1]} : vector<64x128xf32> to vector<8x128xf32>
    %cst_45 = arith.constant dense<0.000000e+00> : vector<8x128xf32>
    %165 = tpu.matmul %140, %2, %cst_45 {dimension_numbers = #tpu.dot_dimension_numbers<[1], [0], [0], [1], [0, 0, 1, 1], [], []>} : vector<8x32xf32>, vector<32x128xf32>, vector<8x128xf32> -> vector<8x128xf32>
    %166 = arith.addf %164, %165 : vector<8x128xf32>
    %167 = arith.negf %166 : vector<8x128xf32>
    %168 = math.exp %167 : vector<8x128xf32>
    %cst_46 = arith.constant 1.000000e+00 : f32
    %169 = vector.broadcast %cst_46 : f32 to vector<8x128xf32>
    %170 = arith.addf %169, %168 : vector<8x128xf32>
    %171 = arith.divf %169, %170 : vector<8x128xf32>
    %172 = vector.extract_strided_slice %171 {offsets = [0, 0], sizes = [8, 32], strides = [1, 1]} : vector<8x128xf32> to vector<8x32xf32>
    %173 = vector.extract_strided_slice %171 {offsets = [0, 32], sizes = [8, 32], strides = [1, 1]} : vector<8x128xf32> to vector<8x32xf32>
    %174 = vector.extract_strided_slice %171 {offsets = [0, 64], sizes = [8, 32], strides = [1, 1]} : vector<8x128xf32> to vector<8x32xf32>
    %cst_47 = arith.constant 2.000000e+00 : f32
    %175 = vector.broadcast %cst_47 : f32 to vector<8x32xf32>
    %176 = arith.mulf %175, %174 : vector<8x32xf32>
    %cst_48 = arith.constant 1.000000e+00 : f32
    %177 = vector.broadcast %cst_48 : f32 to vector<8x32xf32>
    %178 = arith.subf %176, %177 : vector<8x32xf32>
    %179 = vector.extract_strided_slice %171 {offsets = [0, 96], sizes = [8, 32], strides = [1, 1]} : vector<8x128xf32> to vector<8x32xf32>
    %180 = arith.mulf %173, %138 : vector<8x32xf32>
    %181 = arith.mulf %172, %178 : vector<8x32xf32>
    %182 = arith.addf %180, %181 : vector<8x32xf32>
    %183 = math.tanh %182 : vector<8x32xf32>
    %184 = arith.mulf %179, %183 : vector<8x32xf32>
    %cst_49 = arith.constant dense<0.000000e+00> : vector<8x128xf32>
    %185 = tpu.matmul %140, %1, %cst_49 {dimension_numbers = #tpu.dot_dimension_numbers<[1], [0], [0], [1], [0, 0, 1, 1], [], []>} : vector<8x32xf32>, vector<32x128xf32>, vector<8x128xf32> -> vector<8x128xf32>
    %cst_50 = arith.constant dense<0.000000e+00> : vector<8x128xf32>
    %186 = tpu.matmul %163, %3, %cst_50 {dimension_numbers = #tpu.dot_dimension_numbers<[1], [0], [0], [1], [0, 0, 1, 1], [], []>} : vector<8x32xf32>, vector<32x128xf32>, vector<8x128xf32> -> vector<8x128xf32>
    %187 = arith.addf %185, %186 : vector<8x128xf32>
    %188 = vector.broadcast %5 : vector<1x128xf32> to vector<8x128xf32>
    %189 = arith.addf %187, %188 : vector<8x128xf32>
    %190 = arith.negf %189 : vector<8x128xf32>
    %191 = math.exp %190 : vector<8x128xf32>
    %cst_51 = arith.constant 1.000000e+00 : f32
    %192 = vector.broadcast %cst_51 : f32 to vector<8x128xf32>
    %193 = arith.addf %192, %191 : vector<8x128xf32>
    %194 = arith.divf %192, %193 : vector<8x128xf32>
    %195 = vector.extract_strided_slice %194 {offsets = [0, 0], sizes = [8, 32], strides = [1, 1]} : vector<8x128xf32> to vector<8x32xf32>
    %196 = vector.extract_strided_slice %194 {offsets = [0, 32], sizes = [8, 32], strides = [1, 1]} : vector<8x128xf32> to vector<8x32xf32>
    %197 = vector.extract_strided_slice %194 {offsets = [0, 64], sizes = [8, 32], strides = [1, 1]} : vector<8x128xf32> to vector<8x32xf32>
    %cst_52 = arith.constant 2.000000e+00 : f32
    %198 = vector.broadcast %cst_52 : f32 to vector<8x32xf32>
    %199 = arith.mulf %198, %197 : vector<8x32xf32>
    %cst_53 = arith.constant 1.000000e+00 : f32
    %200 = vector.broadcast %cst_53 : f32 to vector<8x32xf32>
    %201 = arith.subf %199, %200 : vector<8x32xf32>
    %202 = vector.extract_strided_slice %194 {offsets = [0, 96], sizes = [8, 32], strides = [1, 1]} : vector<8x128xf32> to vector<8x32xf32>
    %203 = arith.mulf %196, %161 : vector<8x32xf32>
    %204 = arith.mulf %195, %201 : vector<8x32xf32>
    %205 = arith.addf %203, %204 : vector<8x32xf32>
    %206 = math.tanh %205 : vector<8x32xf32>
    %207 = arith.mulf %202, %206 : vector<8x32xf32>
    %208 = vector.extract_strided_slice %9 {offsets = [40, 0], sizes = [8, 128], strides = [1, 1]} : vector<64x128xf32> to vector<8x128xf32>
    %cst_54 = arith.constant dense<0.000000e+00> : vector<8x128xf32>
    %209 = tpu.matmul %184, %2, %cst_54 {dimension_numbers = #tpu.dot_dimension_numbers<[1], [0], [0], [1], [0, 0, 1, 1], [], []>} : vector<8x32xf32>, vector<32x128xf32>, vector<8x128xf32> -> vector<8x128xf32>
    %210 = arith.addf %208, %209 : vector<8x128xf32>
    %211 = arith.negf %210 : vector<8x128xf32>
    %212 = math.exp %211 : vector<8x128xf32>
    %cst_55 = arith.constant 1.000000e+00 : f32
    %213 = vector.broadcast %cst_55 : f32 to vector<8x128xf32>
    %214 = arith.addf %213, %212 : vector<8x128xf32>
    %215 = arith.divf %213, %214 : vector<8x128xf32>
    %216 = vector.extract_strided_slice %215 {offsets = [0, 0], sizes = [8, 32], strides = [1, 1]} : vector<8x128xf32> to vector<8x32xf32>
    %217 = vector.extract_strided_slice %215 {offsets = [0, 32], sizes = [8, 32], strides = [1, 1]} : vector<8x128xf32> to vector<8x32xf32>
    %218 = vector.extract_strided_slice %215 {offsets = [0, 64], sizes = [8, 32], strides = [1, 1]} : vector<8x128xf32> to vector<8x32xf32>
    %cst_56 = arith.constant 2.000000e+00 : f32
    %219 = vector.broadcast %cst_56 : f32 to vector<8x32xf32>
    %220 = arith.mulf %219, %218 : vector<8x32xf32>
    %cst_57 = arith.constant 1.000000e+00 : f32
    %221 = vector.broadcast %cst_57 : f32 to vector<8x32xf32>
    %222 = arith.subf %220, %221 : vector<8x32xf32>
    %223 = vector.extract_strided_slice %215 {offsets = [0, 96], sizes = [8, 32], strides = [1, 1]} : vector<8x128xf32> to vector<8x32xf32>
    %224 = arith.mulf %217, %182 : vector<8x32xf32>
    %225 = arith.mulf %216, %222 : vector<8x32xf32>
    %226 = arith.addf %224, %225 : vector<8x32xf32>
    %227 = math.tanh %226 : vector<8x32xf32>
    %228 = arith.mulf %223, %227 : vector<8x32xf32>
    %cst_58 = arith.constant dense<0.000000e+00> : vector<8x128xf32>
    %229 = tpu.matmul %184, %1, %cst_58 {dimension_numbers = #tpu.dot_dimension_numbers<[1], [0], [0], [1], [0, 0, 1, 1], [], []>} : vector<8x32xf32>, vector<32x128xf32>, vector<8x128xf32> -> vector<8x128xf32>
    %cst_59 = arith.constant dense<0.000000e+00> : vector<8x128xf32>
    %230 = tpu.matmul %207, %3, %cst_59 {dimension_numbers = #tpu.dot_dimension_numbers<[1], [0], [0], [1], [0, 0, 1, 1], [], []>} : vector<8x32xf32>, vector<32x128xf32>, vector<8x128xf32> -> vector<8x128xf32>
    %231 = arith.addf %229, %230 : vector<8x128xf32>
    %232 = vector.broadcast %5 : vector<1x128xf32> to vector<8x128xf32>
    %233 = arith.addf %231, %232 : vector<8x128xf32>
    %234 = arith.negf %233 : vector<8x128xf32>
    %235 = math.exp %234 : vector<8x128xf32>
    %cst_60 = arith.constant 1.000000e+00 : f32
    %236 = vector.broadcast %cst_60 : f32 to vector<8x128xf32>
    %237 = arith.addf %236, %235 : vector<8x128xf32>
    %238 = arith.divf %236, %237 : vector<8x128xf32>
    %239 = vector.extract_strided_slice %238 {offsets = [0, 0], sizes = [8, 32], strides = [1, 1]} : vector<8x128xf32> to vector<8x32xf32>
    %240 = vector.extract_strided_slice %238 {offsets = [0, 32], sizes = [8, 32], strides = [1, 1]} : vector<8x128xf32> to vector<8x32xf32>
    %241 = vector.extract_strided_slice %238 {offsets = [0, 64], sizes = [8, 32], strides = [1, 1]} : vector<8x128xf32> to vector<8x32xf32>
    %cst_61 = arith.constant 2.000000e+00 : f32
    %242 = vector.broadcast %cst_61 : f32 to vector<8x32xf32>
    %243 = arith.mulf %242, %241 : vector<8x32xf32>
    %cst_62 = arith.constant 1.000000e+00 : f32
    %244 = vector.broadcast %cst_62 : f32 to vector<8x32xf32>
    %245 = arith.subf %243, %244 : vector<8x32xf32>
    %246 = vector.extract_strided_slice %238 {offsets = [0, 96], sizes = [8, 32], strides = [1, 1]} : vector<8x128xf32> to vector<8x32xf32>
    %247 = arith.mulf %240, %205 : vector<8x32xf32>
    %248 = arith.mulf %239, %245 : vector<8x32xf32>
    %249 = arith.addf %247, %248 : vector<8x32xf32>
    %250 = math.tanh %249 : vector<8x32xf32>
    %251 = arith.mulf %246, %250 : vector<8x32xf32>
    %252 = vector.extract_strided_slice %9 {offsets = [48, 0], sizes = [8, 128], strides = [1, 1]} : vector<64x128xf32> to vector<8x128xf32>
    %cst_63 = arith.constant dense<0.000000e+00> : vector<8x128xf32>
    %253 = tpu.matmul %228, %2, %cst_63 {dimension_numbers = #tpu.dot_dimension_numbers<[1], [0], [0], [1], [0, 0, 1, 1], [], []>} : vector<8x32xf32>, vector<32x128xf32>, vector<8x128xf32> -> vector<8x128xf32>
    %254 = arith.addf %252, %253 : vector<8x128xf32>
    %255 = arith.negf %254 : vector<8x128xf32>
    %256 = math.exp %255 : vector<8x128xf32>
    %cst_64 = arith.constant 1.000000e+00 : f32
    %257 = vector.broadcast %cst_64 : f32 to vector<8x128xf32>
    %258 = arith.addf %257, %256 : vector<8x128xf32>
    %259 = arith.divf %257, %258 : vector<8x128xf32>
    %260 = vector.extract_strided_slice %259 {offsets = [0, 0], sizes = [8, 32], strides = [1, 1]} : vector<8x128xf32> to vector<8x32xf32>
    %261 = vector.extract_strided_slice %259 {offsets = [0, 32], sizes = [8, 32], strides = [1, 1]} : vector<8x128xf32> to vector<8x32xf32>
    %262 = vector.extract_strided_slice %259 {offsets = [0, 64], sizes = [8, 32], strides = [1, 1]} : vector<8x128xf32> to vector<8x32xf32>
    %cst_65 = arith.constant 2.000000e+00 : f32
    %263 = vector.broadcast %cst_65 : f32 to vector<8x32xf32>
    %264 = arith.mulf %263, %262 : vector<8x32xf32>
    %cst_66 = arith.constant 1.000000e+00 : f32
    %265 = vector.broadcast %cst_66 : f32 to vector<8x32xf32>
    %266 = arith.subf %264, %265 : vector<8x32xf32>
    %267 = vector.extract_strided_slice %259 {offsets = [0, 96], sizes = [8, 32], strides = [1, 1]} : vector<8x128xf32> to vector<8x32xf32>
    %268 = arith.mulf %261, %226 : vector<8x32xf32>
    %269 = arith.mulf %260, %266 : vector<8x32xf32>
    %270 = arith.addf %268, %269 : vector<8x32xf32>
    %271 = math.tanh %270 : vector<8x32xf32>
    %272 = arith.mulf %267, %271 : vector<8x32xf32>
    %cst_67 = arith.constant dense<0.000000e+00> : vector<8x128xf32>
    %273 = tpu.matmul %228, %1, %cst_67 {dimension_numbers = #tpu.dot_dimension_numbers<[1], [0], [0], [1], [0, 0, 1, 1], [], []>} : vector<8x32xf32>, vector<32x128xf32>, vector<8x128xf32> -> vector<8x128xf32>
    %cst_68 = arith.constant dense<0.000000e+00> : vector<8x128xf32>
    %274 = tpu.matmul %251, %3, %cst_68 {dimension_numbers = #tpu.dot_dimension_numbers<[1], [0], [0], [1], [0, 0, 1, 1], [], []>} : vector<8x32xf32>, vector<32x128xf32>, vector<8x128xf32> -> vector<8x128xf32>
    %275 = arith.addf %273, %274 : vector<8x128xf32>
    %276 = vector.broadcast %5 : vector<1x128xf32> to vector<8x128xf32>
    %277 = arith.addf %275, %276 : vector<8x128xf32>
    %278 = arith.negf %277 : vector<8x128xf32>
    %279 = math.exp %278 : vector<8x128xf32>
    %cst_69 = arith.constant 1.000000e+00 : f32
    %280 = vector.broadcast %cst_69 : f32 to vector<8x128xf32>
    %281 = arith.addf %280, %279 : vector<8x128xf32>
    %282 = arith.divf %280, %281 : vector<8x128xf32>
    %283 = vector.extract_strided_slice %282 {offsets = [0, 0], sizes = [8, 32], strides = [1, 1]} : vector<8x128xf32> to vector<8x32xf32>
    %284 = vector.extract_strided_slice %282 {offsets = [0, 32], sizes = [8, 32], strides = [1, 1]} : vector<8x128xf32> to vector<8x32xf32>
    %285 = vector.extract_strided_slice %282 {offsets = [0, 64], sizes = [8, 32], strides = [1, 1]} : vector<8x128xf32> to vector<8x32xf32>
    %cst_70 = arith.constant 2.000000e+00 : f32
    %286 = vector.broadcast %cst_70 : f32 to vector<8x32xf32>
    %287 = arith.mulf %286, %285 : vector<8x32xf32>
    %cst_71 = arith.constant 1.000000e+00 : f32
    %288 = vector.broadcast %cst_71 : f32 to vector<8x32xf32>
    %289 = arith.subf %287, %288 : vector<8x32xf32>
    %290 = vector.extract_strided_slice %282 {offsets = [0, 96], sizes = [8, 32], strides = [1, 1]} : vector<8x128xf32> to vector<8x32xf32>
    %291 = arith.mulf %284, %249 : vector<8x32xf32>
    %292 = arith.mulf %283, %289 : vector<8x32xf32>
    %293 = arith.addf %291, %292 : vector<8x32xf32>
    %294 = math.tanh %293 : vector<8x32xf32>
    %295 = arith.mulf %290, %294 : vector<8x32xf32>
    %296 = vector.extract_strided_slice %9 {offsets = [56, 0], sizes = [8, 128], strides = [1, 1]} : vector<64x128xf32> to vector<8x128xf32>
    %cst_72 = arith.constant dense<0.000000e+00> : vector<8x128xf32>
    %297 = tpu.matmul %272, %2, %cst_72 {dimension_numbers = #tpu.dot_dimension_numbers<[1], [0], [0], [1], [0, 0, 1, 1], [], []>} : vector<8x32xf32>, vector<32x128xf32>, vector<8x128xf32> -> vector<8x128xf32>
    %298 = arith.addf %296, %297 : vector<8x128xf32>
    %299 = arith.negf %298 : vector<8x128xf32>
    %300 = math.exp %299 : vector<8x128xf32>
    %cst_73 = arith.constant 1.000000e+00 : f32
    %301 = vector.broadcast %cst_73 : f32 to vector<8x128xf32>
    %302 = arith.addf %301, %300 : vector<8x128xf32>
    %303 = arith.divf %301, %302 : vector<8x128xf32>
    %304 = vector.extract_strided_slice %303 {offsets = [0, 0], sizes = [8, 32], strides = [1, 1]} : vector<8x128xf32> to vector<8x32xf32>
    %305 = vector.extract_strided_slice %303 {offsets = [0, 32], sizes = [8, 32], strides = [1, 1]} : vector<8x128xf32> to vector<8x32xf32>
    %306 = vector.extract_strided_slice %303 {offsets = [0, 64], sizes = [8, 32], strides = [1, 1]} : vector<8x128xf32> to vector<8x32xf32>
    %cst_74 = arith.constant 2.000000e+00 : f32
    %307 = vector.broadcast %cst_74 : f32 to vector<8x32xf32>
    %308 = arith.mulf %307, %306 : vector<8x32xf32>
    %cst_75 = arith.constant 1.000000e+00 : f32
    %309 = vector.broadcast %cst_75 : f32 to vector<8x32xf32>
    %310 = arith.subf %308, %309 : vector<8x32xf32>
    %311 = vector.extract_strided_slice %303 {offsets = [0, 96], sizes = [8, 32], strides = [1, 1]} : vector<8x128xf32> to vector<8x32xf32>
    %312 = arith.mulf %305, %270 : vector<8x32xf32>
    %313 = arith.mulf %304, %310 : vector<8x32xf32>
    %314 = arith.addf %312, %313 : vector<8x32xf32>
    %315 = math.tanh %314 : vector<8x32xf32>
    %316 = arith.mulf %311, %315 : vector<8x32xf32>
    %cst_76 = arith.constant dense<0.000000e+00> : vector<8x128xf32>
    %317 = tpu.matmul %272, %1, %cst_76 {dimension_numbers = #tpu.dot_dimension_numbers<[1], [0], [0], [1], [0, 0, 1, 1], [], []>} : vector<8x32xf32>, vector<32x128xf32>, vector<8x128xf32> -> vector<8x128xf32>
    %cst_77 = arith.constant dense<0.000000e+00> : vector<8x128xf32>
    %318 = tpu.matmul %295, %3, %cst_77 {dimension_numbers = #tpu.dot_dimension_numbers<[1], [0], [0], [1], [0, 0, 1, 1], [], []>} : vector<8x32xf32>, vector<32x128xf32>, vector<8x128xf32> -> vector<8x128xf32>
    %319 = arith.addf %317, %318 : vector<8x128xf32>
    %320 = vector.broadcast %5 : vector<1x128xf32> to vector<8x128xf32>
    %321 = arith.addf %319, %320 : vector<8x128xf32>
    %322 = arith.negf %321 : vector<8x128xf32>
    %323 = math.exp %322 : vector<8x128xf32>
    %cst_78 = arith.constant 1.000000e+00 : f32
    %324 = vector.broadcast %cst_78 : f32 to vector<8x128xf32>
    %325 = arith.addf %324, %323 : vector<8x128xf32>
    %326 = arith.divf %324, %325 : vector<8x128xf32>
    %327 = vector.extract_strided_slice %326 {offsets = [0, 0], sizes = [8, 32], strides = [1, 1]} : vector<8x128xf32> to vector<8x32xf32>
    %328 = vector.extract_strided_slice %326 {offsets = [0, 32], sizes = [8, 32], strides = [1, 1]} : vector<8x128xf32> to vector<8x32xf32>
    %329 = vector.extract_strided_slice %326 {offsets = [0, 64], sizes = [8, 32], strides = [1, 1]} : vector<8x128xf32> to vector<8x32xf32>
    %cst_79 = arith.constant 2.000000e+00 : f32
    %330 = vector.broadcast %cst_79 : f32 to vector<8x32xf32>
    %331 = arith.mulf %330, %329 : vector<8x32xf32>
    %cst_80 = arith.constant 1.000000e+00 : f32
    %332 = vector.broadcast %cst_80 : f32 to vector<8x32xf32>
    %333 = arith.subf %331, %332 : vector<8x32xf32>
    %334 = vector.extract_strided_slice %326 {offsets = [0, 96], sizes = [8, 32], strides = [1, 1]} : vector<8x128xf32> to vector<8x32xf32>
    %335 = arith.mulf %328, %293 : vector<8x32xf32>
    %336 = arith.mulf %327, %333 : vector<8x32xf32>
    %337 = arith.addf %335, %336 : vector<8x32xf32>
    %338 = math.tanh %337 : vector<8x32xf32>
    %339 = arith.mulf %334, %338 : vector<8x32xf32>
    %cst_81 = arith.constant dense<0.000000e+00> : vector<8x128xf32>
    %340 = tpu.matmul %316, %1, %cst_81 {dimension_numbers = #tpu.dot_dimension_numbers<[1], [0], [0], [1], [0, 0, 1, 1], [], []>} : vector<8x32xf32>, vector<32x128xf32>, vector<8x128xf32> -> vector<8x128xf32>
    %cst_82 = arith.constant dense<0.000000e+00> : vector<8x128xf32>
    %341 = tpu.matmul %339, %3, %cst_82 {dimension_numbers = #tpu.dot_dimension_numbers<[1], [0], [0], [1], [0, 0, 1, 1], [], []>} : vector<8x32xf32>, vector<32x128xf32>, vector<8x128xf32> -> vector<8x128xf32>
    %342 = arith.addf %340, %341 : vector<8x128xf32>
    %343 = vector.broadcast %5 : vector<1x128xf32> to vector<8x128xf32>
    %344 = arith.addf %342, %343 : vector<8x128xf32>
    %345 = arith.negf %344 : vector<8x128xf32>
    %346 = math.exp %345 : vector<8x128xf32>
    %cst_83 = arith.constant 1.000000e+00 : f32
    %347 = vector.broadcast %cst_83 : f32 to vector<8x128xf32>
    %348 = arith.addf %347, %346 : vector<8x128xf32>
    %349 = arith.divf %347, %348 : vector<8x128xf32>
    %350 = vector.extract_strided_slice %349 {offsets = [0, 0], sizes = [8, 32], strides = [1, 1]} : vector<8x128xf32> to vector<8x32xf32>
    %351 = vector.extract_strided_slice %349 {offsets = [0, 32], sizes = [8, 32], strides = [1, 1]} : vector<8x128xf32> to vector<8x32xf32>
    %352 = vector.extract_strided_slice %349 {offsets = [0, 64], sizes = [8, 32], strides = [1, 1]} : vector<8x128xf32> to vector<8x32xf32>
    %cst_84 = arith.constant 2.000000e+00 : f32
    %353 = vector.broadcast %cst_84 : f32 to vector<8x32xf32>
    %354 = arith.mulf %353, %352 : vector<8x32xf32>
    %cst_85 = arith.constant 1.000000e+00 : f32
    %355 = vector.broadcast %cst_85 : f32 to vector<8x32xf32>
    %356 = arith.subf %354, %355 : vector<8x32xf32>
    %357 = vector.extract_strided_slice %349 {offsets = [0, 96], sizes = [8, 32], strides = [1, 1]} : vector<8x128xf32> to vector<8x32xf32>
    %358 = arith.mulf %351, %337 : vector<8x32xf32>
    %359 = arith.mulf %350, %356 : vector<8x32xf32>
    %360 = arith.addf %358, %359 : vector<8x32xf32>
    %361 = math.tanh %360 : vector<8x32xf32>
    %362 = arith.mulf %357, %361 : vector<8x32xf32>
    %c0_86 = arith.constant 0 : index
    %c0_87 = arith.constant 0 : index
    %363 = vector.load %arg7[%c0_86, %c0_87] : memref<32x128xf32, #tpu.memory_space<vmem>>, vector<32x128xf32>
    %cst_88 = arith.constant dense<0.000000e+00> : vector<8x128xf32>
    %364 = tpu.matmul %362, %363, %cst_88 {dimension_numbers = #tpu.dot_dimension_numbers<[1], [0], [0], [1], [0, 0, 1, 1], [], []>} : vector<8x32xf32>, vector<32x128xf32>, vector<8x128xf32> -> vector<8x128xf32>
    %c0_89 = arith.constant 0 : index
    %c0_90 = arith.constant 0 : index
    %365 = vector.load %arg8[%c0_89, %c0_90] : memref<1x128xf32, #tpu.memory_space<vmem>>, vector<1x128xf32>
    %366 = vector.broadcast %365 : vector<1x128xf32> to vector<8x128xf32>
    %367 = arith.addf %364, %366 : vector<8x128xf32>
    %c0_91 = arith.constant 0 : index
    %c0_92 = arith.constant 0 : index
    %368 = vector.load %arg9[%c0_91, %c0_92] : memref<8x128xf32, #tpu.memory_space<vmem>>, vector<8x128xf32>
    tpu.vector_store %arg9[%c0_91, %c0_92], %367 {strides = array<i32>} : memref<8x128xf32, #tpu.memory_space<vmem>>, vector<8x128xf32>,
    return
  }
}

</mosaic_0001>

<bundles_post_ra>
// kernel: tpu_custom_call.1
= control target key start
LH: loop header
LB: loop body
LE: loop exit
PB: predicated region body
PF: predicated region fallthrough
CT: control target
= control target key end

     0   :  { %14 = vsyncpa [#allocation3], 0  ;;  %s2073_s0 = inlined_call_operand.vmem [shape: f32[64,16], index: 0, kind: input, shape index: {}]   ;;  %s2074_s1 = inlined_call_operand.vmem [shape: f32[16,128], index: 1, kind: input, shape index: {}]   ;;  %s2075_s2 = inlined_call_operand.vmem [shape: f32[32,128], index: 2, kind: input, shape index: {}]   ;;  %s2076_s3 = inlined_call_operand.vmem [shape: f32[1,128], index: 3, kind: input, shape index: {}]   ;;  %s2077_s4 = inlined_call_operand.vmem [shape: f32[32,128], index: 4, kind: input, shape index: {}]   ;;  %s2078_s5 = inlined_call_operand.hbm [shape: f32[32,128], index: 5, kind: input, shape index: {}]   ;;  %s2079_s6 = inlined_call_operand.vmem [shape: f32[1,128], index: 6, kind: input, shape index: {}]   ;;  %s2080_s7 = inlined_call_operand.hbm [shape: f32[32,128], index: 7, kind: input, shape index: {}]   ;;  %s2081_s8 = inlined_call_operand.vmem [shape: f32[1,128], index: 8, kind: input, shape index: {}]   ;;  %s2082_s9 = inlined_call_operand.hbm [shape: f32[8,128], index: 9, kind: output, shape index: {}]  }
   0x1   :  { %15 = vsyncpa [#allocation6], 0 }
   0x2   :  { %16 = vsyncpa [#allocation4], 0  ;;  %s31_s11 = sshll.u32 %s2078_s5, 4  ;;  %s1646_s12 = smov [#allocation2]   ;;  %s32_s11 = int_to_ptr.hbm [resolvable:$true] %s31_s11 }
   0x3   :  { %s33_s13 = sshll.u32 %s1646_s12, 4  ;;  %s46_s16 = sshll.u32 %s2080_s7, 4  ;;  %s34_s13 = int_to_ptr.vmem [resolvable:$true] %s33_s13  ;;  %s47_s16 = int_to_ptr.hbm [resolvable:$true] %s46_s16 }
   0x4   :  { %s1647_s17 = smov 128   ;;  %s1648_s18 = smov 8  }
   0x5   :  { %39 = dma.hbm_to_vmem [thread:$0]  %s32_s11, 512, %s34_s13, [#allocation3], %s1647_s17, %s1647_s17, %s1648_s18  }
   0x6   :  { %s1649_s19 = smov [#allocation5]  }
   0x7   :  { %s48_s20 = sshll.u32 %s1649_s19, 4  ;;  %s49_s20 = int_to_ptr.vmem [resolvable:$true] %s48_s20 }
   0x8   :  { %54 = dma.hbm_to_vmem [thread:$0]  %s47_s16, 512, %s49_s20, [#allocation6], %s1647_s17, %s1647_s17, %s1648_s18  }
   0x9   :  { %1640 = dma.done.wait [#allocation3], 512  }
   0xa   :  { %1641 = vsyncadd [#allocation3], 4294966784 }
   0xb   :  { %1642 = dma.done.wait [#allocation6], 512  }
   0xc   :  { %1643 = vsyncadd [#allocation6], 4294966784  ;;  %v1713_v0 = vld [vmem:[%s2075_s2 + $0x18] sm:$0xff]  ;;  %v66_v1 = vld [vmem:[%s2074_s1 + $0x8] sm:$0xff]  ;;  %vm92_vm0 = vcmask 130048   ;;  %v1650_v7 = vmov 0.0  }
   0xd   :  { %v1721_v2 = vld [vmem:[%s2075_s2 + $0x10] sm:$0xff]  ;;  %174 = vmatpush.msra.mxu1 %v1713_v0  ;;  %131 = vmatpush.msra.mxu0 %v66_v1  ;;  %v65_v3 = vld [vmem:[%s2074_s1] sm:$0xff]  ;;  %v1733_v5 = vld [vmem:[%s2075_s2 + $0x8] sm:$0xff]  ;;  %s1651_s12 = smov 64   ;;  %s1652_s13 = smov 32   ;;  %vm158_vm5 = vcmask 261120  }
   0xe   :  { %v81_v4 = vld [vmem:[%s2073_s0] sm:$0xff]  ;;  %238 = vmatpush.msra.mxu2 %v1713_v0  ;;  %v1764_v34 = vld [vmem:[#allocation2 + $0x18] sm:$0xff]  ;;  %v1766_v35 = vld [vmem:[#allocation2 + $0x10] sm:$0xff]  ;;  %s1385_s20 = sshll.u32 %s2082_s9, 4  ;;  %s1386_s20 = int_to_ptr.hbm [resolvable:$true] %s1385_s20 }
   0xf   :  { %175 = vmatpush.msra.mxu1 %v1721_v2  ;;  %132 = vmatpush.msra.mxu0 %v65_v3  ;;  %v1741_v6 = vld [vmem:[%s2075_s2] sm:$0xff]  ;;  %v1772_v36 = vld [vmem:[%s2077_s4 + $0x18] sm:$0xff]  ;;  %v1777_v37 = vld [vmem:[%s2077_s4 + $0x10] sm:$0xff] }
  0x10   :  { %1396 = vmatmul.msk.f32.vlgmr.msra.gmra.mxu0 %vm92_vm0, %v81_v4  ;;  %239 = vmatpush.msra.mxu2 %v1721_v2  ;;  %v1755_v8 = vld [vmem:[%s2076_s3] ss:$0 sm:$0xff]  ;;  %v1779_v38 = vld [vmem:[#allocation2 + $0x8] sm:$0xff] }
  0x11   :  { %176 = vmatpush.msra.mxu1 %v1733_v5  ;;  %297 = vmatpush.msra.mxu3 %v1764_v34  ;;  %v1786_v39 = vld [vmem:[%s2077_s4 + $0x8] sm:$0xff]  ;;  %v1788_v40 = vld [vmem:[#allocation2] sm:$0xff] }
  0x12   :  { %240 = vmatpush.msra.mxu2 %v1733_v5  ;;  %v1795_v41 = vld [vmem:[%s2077_s4] sm:$0xff]  ;;  %v82_v44 = vld [vmem:[%s2073_s0 + $0x8] sm:$0xff] }
  0x13   :  { %177 = vmatpush.msra.mxu1 %v1741_v6  ;;  %298 = vmatpush.msra.mxu3 %v1766_v35  ;;  %v1830_v47 = vld [vmem:[%s2079_s6] ss:$0 sm:$0xff] }
  0x14   :  { %178 = vmatmul.f32.vlgmr.msra.gmra.mxu1 %v1650_v7  ;;  %241 = vmatpush.msra.mxu2 %v1741_v6 }
  0x15   :  { %317 = vmatpush.msrb.mxu1 %v1772_v36  ;;  %299 = vmatpush.msra.mxu3 %v1779_v38 }
  0x16   :  { %384 = vmatpush.msrb.mxu2 %v1713_v0 }
  0x17   :  { %318 = vmatpush.msrb.mxu1 %v1777_v37  ;;  %300 = vmatpush.msra.mxu3 %v1788_v40 }
  0x18   :  { %385 = vmatpush.msrb.mxu2 %v1721_v2  ;;  %301 = vmatmul.f32.vlgmr.msra.gmra.mxu3 %v1650_v7 }
  0x19   :  { %319 = vmatpush.msrb.mxu1 %v1786_v39  ;;  %448 = vmatpush.msrb.mxu3 %v1764_v34 }
  0x1a   :  { %386 = vmatpush.msrb.mxu2 %v1733_v5  ;;  %1397 = vmatmul.msk.f32.gmra.mxu0 %vm92_vm0, %v82_v44 }
  0x1b   :  { %320 = vmatpush.msrb.mxu1 %v1795_v41  ;;  %449 = vmatpush.msrb.mxu3 %v1766_v35 }
  0x1c   :  { %387 = vmatpush.msrb.mxu2 %v1741_v6 }
  0x1d   :  { %468 = vmatpush.msra.mxu1 %v1772_v36  ;;  %450 = vmatpush.msrb.mxu3 %v1779_v38 }
  0x1f   :  { %469 = vmatpush.msra.mxu1 %v1777_v37  ;;  %451 = vmatpush.msrb.mxu3 %v1788_v40 }
  0x21   :  { %470 = vmatpush.msra.mxu1 %v1786_v39  ;;  %596 = vmatpush.msra.mxu3 %v1764_v34 }
  0x23   :  { %471 = vmatpush.msra.mxu1 %v1795_v41  ;;  %597 = vmatpush.msra.mxu3 %v1766_v35 }
  0x25   :  { %598 = vmatpush.msra.mxu3 %v1779_v38 }
  0x27   :  { %599 = vmatpush.msra.mxu3 %v1788_v40 }
  0x8d   :  { %v134_v9 = vpop.f32.mrf.mxu0 }
  0x8e   :  { %v135_v10 = vadd.f32 %v1755_v8, %v134_v9 }
  0x91   :  { %v179_v11 = vpop.f32.mrf.mxu1 }
  0x92   :  { %v182_v12 = vadd.f32 %v179_v11, %v135_v10 }
  0x94   :  { %v1404_v13 = vmul.f32 -1.442695, %v182_v12 }
  0x96   :  { %1470 = vpow2.f32 %v1404_v13 }
  0x97   :  { %v137_v49 = vpop.f32.mrf.mxu0 }
  0x98   :  { %v138_v52 = vadd.f32 %v1755_v8, %v137_v49 }
  0x9b   :  { %v302_v46 = vpop.f32.mrf.mxu3 }
  0x9c   :  { %v1471_v14 = vpop.eup %1470 }
  0x9d   :  { %v186_v15 = vadd.f32 1.0, %v1471_v14 }
  0x9f   :  { %1472 = vrcp.f32 %v186_v15  ;;  %v198_v19 = vand.u32 2147483648, %v186_v15  ;;  %v196_v21 = vand.u32 2147483647, %v186_v15  ;;  %vm192_vm2 = vweird.f32 %v186_v15 }
  0xa1   :  { %v199_v23 = vor.u32 1.1754944e-38, %v198_v19  ;;  %vm197_vm4 = vcmp.eq.f32.partialorder %v196_v21, 8.507059e+37 }
  0xa5   :  { %v1473_v16 = vpop.eup %1472 }
  0xa6   :  { %v188_v17 = vmul.f32 %v1473_v16, %v186_v15  ;;  %vm193_vm1 = vweird.f32 %v1473_v16 }
  0xa7   :  { %vm194_vm3 = vmor %vm192_vm2, %vm193_vm1 }
  0xa8   :  { %v189_v18 = vsub.f32 1.0, %v188_v17 }
  0xaa   :  { %v190_v20 = vmul.f32 %v1473_v16, %v189_v18 }
  0xac   :  { %v191_v22 = vadd.f32 %v1473_v16, %v190_v20 }
  0xae   :  { %v195_v24 = vsel %vm194_vm3, %v1473_v16, %v191_v22 }
  0xaf   :  { %v200_v25 = vsel %vm197_vm4, %v199_v23, %v195_v24 }
  0xb0   :  { %v202_v26 = vmul.f32 2.0, %v200_v25  ;;  %v204_v30 = vmul.f32 0.0, %v200_v25 }
  0xb2   :  { %v1405_v27 = vadd.f32 -1.0, %v202_v26 }
  0xb4   :  { %206 = vrot.lane.b32.xlu0 %v1405_v27, %s1651_s12 }
 0x126   :  { %v207_v28 = vpop.permute.xlu0 %206 }
 0x127   :  { %v209_v29 = vmul.f32 %v207_v28, %v200_v25 }
 0x129   :  { %211 = vrot.lane.b32.xlu0 %v209_v29, %s1652_s13 }
 0x19b   :  { %v212_v31 = vpop.permute.xlu0 %211 }
 0x19c   :  { %v1760_v32 = vadd.f32 %v212_v31, %v204_v30 }
 0x19e   :  { %1474 = vtanh.f32 %v1760_v32 }
 0x1a4   :  { %v1475_v33 = vpop.eup %1474 }
 0x1a5   :  { %217 = vrot.lane.b32.xlu1 %v1475_v33, %s1651_s12 }
 0x217   :  { %v218_v42 = vpop.permute.xlu1 %217 }
 0x218   :  { %v220_v43 = vmul.f32 %v218_v42, %v200_v25 }
 0x21a   :  { %222 = vrot.lane.b32.xlu1 %v220_v43, %s1652_s13 }
 0x28c   :  { %v223_v45 = vpop.permute.xlu1 %222 }
 0x28d   :  { %1406 = vmatmul.msk.f32.vlgmr.msra.gmra.mxu2 %vm158_vm5, %v223_v45  ;;  %1409 = vmatmul.msk.f32.vlgmr.msrb.gmra.mxu1 %vm158_vm5, %v223_v45 }
 0x28e   :  { %532 = vmatpush.msra.mxu2 %v1713_v0  ;;  %616 = vmatpush.msrb.mxu1 %v1772_v36 }
 0x290   :  { %533 = vmatpush.msra.mxu2 %v1721_v2  ;;  %617 = vmatpush.msrb.mxu1 %v1777_v37 }
 0x292   :  { %534 = vmatpush.msra.mxu2 %v1733_v5  ;;  %618 = vmatpush.msrb.mxu1 %v1786_v39 }
 0x294   :  { %535 = vmatpush.msra.mxu2 %v1741_v6  ;;  %619 = vmatpush.msrb.mxu1 %v1795_v41 }
 0x30a   :  { %v322_v48 = vpop.f32.mrf.mxu1 }
 0x30b   :  { %v323_v50 = vadd.f32 %v322_v48, %v302_v46 }
 0x30d   :  { %v328_v51 = vadd.f32 %v1830_v47, %v323_v50 }
 0x30f   :  { %v1410_v53 = vmul.f32 -1.442695, %v328_v51 }
 0x310   :  { %v243_v54 = vpop.f32.mrf.mxu2 }
 0x311   :  { %1476 = vpow2.f32 %v1410_v53  ;;  %v246_v55 = vadd.f32 %v243_v54, %v138_v52 }
 0x313   :  { %v1407_v56 = vmul.f32 -1.442695, %v246_v55 }
 0x315   :  { %1478 = vpow2.f32 %v1407_v56 }
 0x317   :  { %v1477_v57 = vpop.eup %1476 }
 0x318   :  { %v332_v58 = vadd.f32 1.0, %v1477_v57 }
 0x31a   :  { %1480 = vrcp.f32 %v332_v58  ;;  %v342_v3 = vand.u32 2147483647, %v332_v58  ;;  %v344_v4 = vand.u32 2147483648, %v332_v58  ;;  %vm338_vm7 = vweird.f32 %v332_v58 }
 0x31b   :  { %v1479_v59 = vpop.eup %1478 }
 0x31c   :  { %v250_v60 = vadd.f32 1.0, %v1479_v59  ;;  %vm343_vm9 = vcmp.eq.f32.partialorder %v342_v3, 8.507059e+37  ;;  %v345_v12 = vor.u32 1.1754944e-38, %v344_v4 }
 0x31e   :  { %1482 = vrcp.f32 %v250_v60  ;;  %v262_v13 = vand.u32 2147483648, %v250_v60  ;;  %v260_v16 = vand.u32 2147483647, %v250_v60  ;;  %vm256_vm11 = vweird.f32 %v250_v60 }
 0x320   :  { %v1481_v61 = vpop.eup %1480  ;;  %v263_v20 = vor.u32 1.1754944e-38, %v262_v13  ;;  %vm261_vm13 = vcmp.eq.f32.partialorder %v260_v16, 8.507059e+37 }
 0x321   :  { %v334_v62 = vmul.f32 %v1481_v61, %v332_v58  ;;  %vm339_vm6 = vweird.f32 %v1481_v61 }
 0x322   :  { %vm340_vm8 = vmor %vm338_vm7, %vm339_vm6 }
 0x323   :  { %v335_v63 = vsub.f32 1.0, %v334_v62 }
 0x324   :  { %v1483_v1 = vpop.eup %1482 }
 0x325   :  { %v252_v7 = vmul.f32 %v1483_v1, %v250_v60  ;;  %v336_v9 = vmul.f32 %v1481_v61, %v335_v63  ;;  %vm257_vm10 = vweird.f32 %v1483_v1 }
 0x326   :  { %vm258_vm12 = vmor %vm256_vm11, %vm257_vm10 }
 0x327   :  { %v253_v10 = vsub.f32 1.0, %v252_v7  ;;  %v337_v11 = vadd.f32 %v1481_v61, %v336_v9 }
 0x329   :  { %v341_v14 = vsel %vm340_vm8, %v1481_v61, %v337_v11  ;;  %v254_v15 = vmul.f32 %v1483_v1, %v253_v10 }
 0x32a   :  { %v346_v17 = vsel %vm343_vm9, %v345_v12, %v341_v14 }
 0x32b   :  { %v348_v18 = vmul.f32 2.0, %v346_v17  ;;  %v255_v19 = vadd.f32 %v1483_v1, %v254_v15  ;;  %v350_v30 = vmul.f32 0.0, %v346_v17 }
 0x32d   :  { %v1411_v21 = vadd.f32 -1.0, %v348_v18  ;;  %v259_v22 = vsel %vm258_vm12, %v1483_v1, %v255_v19 }
 0x32e   :  { %v264_v23 = vsel %vm261_vm13, %v263_v20, %v259_v22 }
 0x32f   :  { %352 = vrot.lane.b32.xlu2 %v1411_v21, %s1651_s12  ;;  %v266_v24 = vmul.f32 2.0, %v264_v23  ;;  %v268_v42 = vmul.f32 %v264_v23, %v1760_v32  ;;  %v83_v32 = vld [vmem:[%s2073_s0 + $0x10] sm:$0xff] }
 0x330   :  { %1398 = vmatmul.msk.f32.gmra.mxu0 %vm92_vm0, %v83_v32 }
 0x331   :  { %v1408_v25 = vadd.f32 -1.0, %v266_v24 }
 0x337   :  { %270 = vrot.lane.b32.xlu2 %v1408_v25, %s1651_s12 }
 0x389   :  { %v353_v26 = vpop.permute.xlu2 %352 }
 0x38a   :  { %v355_v27 = vmul.f32 %v353_v26, %v346_v17 }
 0x38c   :  { %357 = vrot.lane.b32.xlu0 %v355_v27, %s1652_s13 }
 0x391   :  { %v271_v28 = vpop.permute.xlu2 %270 }
 0x392   :  { %v273_v29 = vmul.f32 %v271_v28, %v264_v23 }
 0x394   :  { %275 = vrot.lane.b32.xlu1 %v273_v29, %s1652_s13 }
 0x3ad   :  { %v140_v54 = vpop.f32.mrf.mxu0 }
 0x3ae   :  { %v141_v59 = vadd.f32 %v1755_v8, %v140_v54 }
 0x3fe   :  { %v358_v31 = vpop.permute.xlu0 %357 }
 0x3ff   :  { %v1838_v33 = vadd.f32 %v358_v31, %v350_v30 }
 0x401   :  { %1484 = vtanh.f32 %v1838_v33 }
 0x406   :  { %v276_v43 = vpop.permute.xlu1 %275 }
 0x407   :  { %v1485_v44 = vpop.eup %1484  ;;  %v1842_v45 = vadd.f32 %v276_v43, %v268_v42 }
 0x408   :  { %363 = vrot.lane.b32.xlu2 %v1485_v44, %s1651_s12 }
 0x409   :  { %1486 = vtanh.f32 %v1842_v45 }
 0x40f   :  { %v1487_v46 = vpop.eup %1486 }
 0x410   :  { %281 = vrot.lane.b32.xlu0 %v1487_v46, %s1651_s12 }
 0x462   :  { %v364_v48 = vpop.permute.xlu2 %363 }
 0x463   :  { %v366_v49 = vmul.f32 %v364_v48, %v346_v17 }
 0x465   :  { %432 = vrot.lane.b32.xlu1 %v366_v49, %s1652_s13 }
 0x482   :  { %v282_v50 = vpop.permute.xlu0 %281 }
 0x483   :  { %v284_v51 = vmul.f32 %v282_v50, %v264_v23 }
 0x485   :  { %368 = vrot.lane.b32.xlu2 %v284_v51, %s1652_s13 }
 0x4d7   :  { %v433_v52 = vpop.permute.xlu1 %432 }
 0x4d8   :  { %1415 = vmatmul.msk.f32.vlgmr.msrb.gmra.mxu3 %vm158_vm5, %v433_v52 }
 0x4d9   :  { %744 = vmatpush.msrb.mxu3 %v1764_v34 }
 0x4db   :  { %745 = vmatpush.msrb.mxu3 %v1766_v35 }
 0x4dd   :  { %746 = vmatpush.msrb.mxu3 %v1779_v38 }
 0x4df   :  { %v369_v53 = vpop.permute.xlu2 %368  ;;  %747 = vmatpush.msrb.mxu3 %v1788_v40 }
 0x4e0   :  { %1412 = vmatmul.msk.f32.vlgmr.msrb.gmra.mxu2 %vm158_vm5, %v369_v53  ;;  %1416 = vmatmul.msk.f32.vlgmr.msra.gmra.mxu1 %vm158_vm5, %v369_v53 }
 0x4e1   :  { %764 = vmatpush.msra.mxu1 %v1772_v36  ;;  %680 = vmatpush.msrb.mxu2 %v1713_v0 }
 0x4e3   :  { %765 = vmatpush.msra.mxu1 %v1777_v37  ;;  %681 = vmatpush.msrb.mxu2 %v1721_v2 }
 0x4e5   :  { %766 = vmatpush.msra.mxu1 %v1786_v39  ;;  %682 = vmatpush.msrb.mxu2 %v1733_v5 }
 0x4e7   :  { %767 = vmatpush.msra.mxu1 %v1795_v41  ;;  %683 = vmatpush.msrb.mxu2 %v1741_v6 }
 0x55b   :  { %v453_v55 = vpop.f32.mrf.mxu3 }
 0x55d   :  { %v473_v56 = vpop.f32.mrf.mxu1 }
 0x55e   :  { %v474_v57 = vadd.f32 %v473_v56, %v453_v55 }
 0x560   :  { %v476_v58 = vadd.f32 %v1830_v47, %v474_v57 }
 0x562   :  { %v1417_v60 = vmul.f32 -1.442695, %v476_v58 }
 0x563   :  { %v389_v61 = vpop.f32.mrf.mxu2 }
 0x564   :  { %1488 = vpow2.f32 %v1417_v60  ;;  %v392_v62 = vadd.f32 %v389_v61, %v141_v59 }
 0x566   :  { %v1413_v63 = vmul.f32 -1.442695, %v392_v62 }
 0x568   :  { %1490 = vpow2.f32 %v1413_v63 }
 0x56a   :  { %v1489_v1 = vpop.eup %1488 }
 0x56b   :  { %v480_v3 = vadd.f32 1.0, %v1489_v1 }
 0x56d   :  { %1492 = vrcp.f32 %v480_v3  ;;  %v490_v13 = vand.u32 2147483647, %v480_v3  ;;  %v492_v14 = vand.u32 2147483648, %v480_v3  ;;  %vm486_vm15 = vweird.f32 %v480_v3 }
 0x56e   :  { %v1491_v4 = vpop.eup %1490 }
 0x56f   :  { %v396_v7 = vadd.f32 1.0, %v1491_v4  ;;  %vm491_vm2 = vcmp.eq.f32.partialorder %v490_v13, 8.507059e+37  ;;  %v493_v19 = vor.u32 1.1754944e-38, %v492_v14 }
 0x571   :  { %1494 = vrcp.f32 %v396_v7  ;;  %v408_v20 = vand.u32 2147483648, %v396_v7  ;;  %v406_v23 = vand.u32 2147483647, %v396_v7  ;;  %vm402_vm4 = vweird.f32 %v396_v7 }
 0x573   :  { %v1493_v9 = vpop.eup %1492  ;;  %v409_v27 = vor.u32 1.1754944e-38, %v408_v20  ;;  %vm407_vm7 = vcmp.eq.f32.partialorder %v406_v23, 8.507059e+37 }
 0x574   :  { %v482_v10 = vmul.f32 %v1493_v9, %v480_v3  ;;  %vm487_vm14 = vweird.f32 %v1493_v9 }
 0x575   :  { %vm488_vm1 = vmor %vm486_vm15, %vm487_vm14 }
 0x576   :  { %v483_v11 = vsub.f32 1.0, %v482_v10 }
 0x577   :  { %v1495_v12 = vpop.eup %1494 }
 0x578   :  { %v398_v15 = vmul.f32 %v1495_v12, %v396_v7  ;;  %v484_v16 = vmul.f32 %v1493_v9, %v483_v11  ;;  %vm403_vm3 = vweird.f32 %v1495_v12 }
 0x579   :  { %vm404_vm6 = vmor %vm402_vm4, %vm403_vm3 }
 0x57a   :  { %v399_v17 = vsub.f32 1.0, %v398_v15  ;;  %v485_v18 = vadd.f32 %v1493_v9, %v484_v16 }
 0x57c   :  { %v489_v21 = vsel %vm488_vm1, %v1493_v9, %v485_v18  ;;  %v400_v22 = vmul.f32 %v1495_v12, %v399_v17 }
 0x57d   :  { %v494_v24 = vsel %vm491_vm2, %v493_v19, %v489_v21 }
 0x57e   :  { %v496_v25 = vmul.f32 2.0, %v494_v24  ;;  %v401_v26 = vadd.f32 %v1495_v12, %v400_v22  ;;  %v498_v49 = vmul.f32 %v494_v24, %v1838_v33 }
 0x580   :  { %v1418_v28 = vadd.f32 -1.0, %v496_v25  ;;  %v405_v29 = vsel %vm404_vm6, %v1495_v12, %v401_v26 }
 0x581   :  { %v410_v30 = vsel %vm407_vm7, %v409_v27, %v405_v29 }
 0x582   :  { %500 = vrot.lane.b32.xlu0 %v1418_v28, %s1651_s12  ;;  %v412_v31 = vmul.f32 2.0, %v410_v30  ;;  %v414_v52 = vmul.f32 %v410_v30, %v1842_v45  ;;  %v84_v45 = vld [vmem:[%s2073_s0 + $0x18] sm:$0xff] }
 0x583   :  { %1399 = vmatmul.msk.f32.gmra.mxu0 %vm92_vm0, %v84_v45 }
 0x584   :  { %v1414_v42 = vadd.f32 -1.0, %v412_v31 }
 0x586   :  { %416 = vrot.lane.b32.xlu1 %v1414_v42, %s1651_s12 }
 0x5f4   :  { %v501_v43 = vpop.permute.xlu0 %500 }
 0x5f5   :  { %v503_v44 = vmul.f32 %v501_v43, %v494_v24 }
 0x5f7   :  { %505 = vrot.lane.b32.xlu2 %v503_v44, %s1652_s13 }
 0x5f8   :  { %v417_v46 = vpop.permute.xlu1 %416 }
 0x5f9   :  { %v419_v48 = vmul.f32 %v417_v46, %v410_v30 }
 0x5fb   :  { %421 = vrot.lane.b32.xlu0 %v419_v48, %s1652_s13 }
 0x600   :  { %v143_v61 = vpop.f32.mrf.mxu0 }
 0x601   :  { %v144_v3 = vadd.f32 %v1755_v8, %v143_v61 }
 0x651   :  { %v506_v50 = vpop.permute.xlu2 %505 }
 0x652   :  { %v1875_v51 = vadd.f32 %v506_v50, %v498_v49 }
 0x654   :  { %1496 = vtanh.f32 %v1875_v51 }
 0x65a   :  { %v1497_v32 = vpop.eup %1496 }
 0x65b   :  { %511 = vrot.lane.b32.xlu1 %v1497_v32, %s1651_s12 }
 0x66d   :  { %v422_v53 = vpop.permute.xlu0 %421 }
 0x66e   :  { %v1880_v54 = vadd.f32 %v422_v53, %v414_v52 }
 0x670   :  { %1498 = vtanh.f32 %v1880_v54 }
 0x676   :  { %v1499_v55 = vpop.eup %1498 }
 0x677   :  { %427 = vrot.lane.b32.xlu2 %v1499_v55, %s1651_s12 }
 0x6cd   :  { %v512_v56 = vpop.permute.xlu1 %511 }
 0x6ce   :  { %v514_v33 = vmul.f32 %v512_v56, %v494_v24 }
 0x6d0   :  { %580 = vrot.lane.b32.xlu0 %v514_v33, %s1652_s13 }
 0x6d1   :  { %v428_v57 = vpop.permute.xlu2 %427 }
 0x6d2   :  { %v430_v58 = vmul.f32 %v428_v57, %v410_v30 }
 0x6d4   :  { %516 = vrot.lane.b32.xlu1 %v430_v58, %s1652_s13 }
 0x742   :  { %v581_v59 = vpop.permute.xlu0 %580 }
 0x743   :  { %1422 = vmatmul.msk.f32.vlgmr.msra.gmra.mxu3 %vm158_vm5, %v581_v59 }
 0x744   :  { %892 = vmatpush.msra.mxu3 %v1764_v34 }
 0x746   :  { %v517_v60 = vpop.permute.xlu1 %516  ;;  %893 = vmatpush.msra.mxu3 %v1766_v35 }
 0x747   :  { %1419 = vmatmul.msk.f32.vlgmr.msra.gmra.mxu2 %vm158_vm5, %v517_v60  ;;  %1423 = vmatmul.msk.f32.vlgmr.msrb.gmra.mxu1 %vm158_vm5, %v517_v60 }
 0x748   :  { %828 = vmatpush.msra.mxu2 %v1713_v0  ;;  %912 = vmatpush.msrb.mxu1 %v1772_v36 }
 0x749   :  { %894 = vmatpush.msra.mxu3 %v1779_v38 }
 0x74a   :  { %829 = vmatpush.msra.mxu2 %v1721_v2  ;;  %913 = vmatpush.msrb.mxu1 %v1777_v37 }
 0x74b   :  { %895 = vmatpush.msra.mxu3 %v1788_v40 }
 0x74c   :  { %830 = vmatpush.msra.mxu2 %v1733_v5  ;;  %914 = vmatpush.msrb.mxu1 %v1786_v39 }
 0x74e   :  { %831 = vmatpush.msra.mxu2 %v1741_v6  ;;  %915 = vmatpush.msrb.mxu1 %v1795_v41 }
 0x7c4   :  { %v621_v62 = vpop.f32.mrf.mxu1 }
 0x7c6   :  { %v601_v63 = vpop.f32.mrf.mxu3 }
 0x7c7   :  { %v622_v1 = vadd.f32 %v621_v62, %v601_v63 }
 0x7c9   :  { %v624_v4 = vadd.f32 %v1830_v47, %v622_v1 }
 0x7ca   :  { %v537_v7 = vpop.f32.mrf.mxu2 }
 0x7cb   :  { %v1424_v9 = vmul.f32 -1.442695, %v624_v4  ;;  %v540_v10 = vadd.f32 %v537_v7, %v144_v3 }
 0x7cd   :  { %1500 = vpow2.f32 %v1424_v9  ;;  %v1420_v11 = vmul.f32 -1.442695, %v540_v10 }
 0x7cf   :  { %1502 = vpow2.f32 %v1420_v11 }
 0x7d3   :  { %v1501_v12 = vpop.eup %1500 }
 0x7d4   :  { %v628_v13 = vadd.f32 1.0, %v1501_v12 }
 0x7d5   :  { %v1503_v14 = vpop.eup %1502 }
 0x7d6   :  { %1504 = vrcp.f32 %v628_v13  ;;  %v544_v15 = vadd.f32 1.0, %v1503_v14  ;;  %v640_v21 = vand.u32 2147483648, %v628_v13  ;;  %v638_v24 = vand.u32 2147483647, %v628_v13 }
 0x7d7   :  { %vm634_vm9 = vweird.f32 %v628_v13 }
 0x7d8   :  { %1506 = vrcp.f32 %v544_v15  ;;  %v556_v25 = vand.u32 2147483648, %v544_v15  ;;  %v554_v28 = vand.u32 2147483647, %v544_v15  ;;  %v641_v29 = vor.u32 1.1754944e-38, %v640_v21 }
 0x7d9   :  { %vm639_vm12 = vcmp.eq.f32.partialorder %v638_v24, 8.507059e+37  ;;  %vm550_vm13 = vweird.f32 %v544_v15 }
 0x7da   :  { %v557_v43 = vor.u32 1.1754944e-38, %v556_v25  ;;  %vm555_vm15 = vcmp.eq.f32.partialorder %v554_v28, 8.507059e+37 }
 0x7dc   :  { %v1505_v16 = vpop.eup %1504 }
 0x7dd   :  { %v630_v17 = vmul.f32 %v1505_v16, %v628_v13  ;;  %vm635_vm8 = vweird.f32 %v1505_v16 }
 0x7de   :  { %v1507_v18 = vpop.eup %1506  ;;  %vm636_vm11 = vmor %vm634_vm9, %vm635_vm8 }
 0x7df   :  { %v631_v19 = vsub.f32 1.0, %v630_v17  ;;  %v546_v20 = vmul.f32 %v1507_v18, %v544_v15  ;;  %vm551_vm10 = vweird.f32 %v1507_v18 }
 0x7e0   :  { %vm552_vm14 = vmor %vm550_vm13, %vm551_vm10 }
 0x7e1   :  { %v547_v22 = vsub.f32 1.0, %v546_v20  ;;  %v632_v23 = vmul.f32 %v1505_v16, %v631_v19 }
 0x7e3   :  { %v633_v26 = vadd.f32 %v1505_v16, %v632_v23  ;;  %v548_v27 = vmul.f32 %v1507_v18, %v547_v22 }
 0x7e5   :  { %v637_v30 = vsel %vm636_vm11, %v1505_v16, %v633_v26  ;;  %v549_v31 = vadd.f32 %v1507_v18, %v548_v27 }
 0x7e6   :  { %v642_v42 = vsel %vm639_vm12, %v641_v29, %v637_v30 }
 0x7e7   :  { %v644_v44 = vmul.f32 2.0, %v642_v42  ;;  %v553_v46 = vsel %vm552_vm14, %v1507_v18, %v549_v31  ;;  %v646_v33 = vmul.f32 %v642_v42, %v1875_v51 }
 0x7e8   :  { %v558_v48 = vsel %vm555_vm15, %v557_v43, %v553_v46 }
 0x7e9   :  { %v1425_v49 = vadd.f32 -1.0, %v644_v44  ;;  %v560_v50 = vmul.f32 2.0, %v558_v48  ;;  %v562_v45 = vmul.f32 %v558_v48, %v1880_v54  ;;  %v85_v54 = vld [vmem:[%s2073_s0 + $0x20] sm:$0xff] }
 0x7ea   :  { %1400 = vmatmul.msk.f32.gmra.mxu0 %vm92_vm0, %v85_v54 }
 0x7eb   :  { %648 = vrot.lane.b32.xlu2 %v1425_v49, %s1651_s12  ;;  %v1421_v32 = vadd.f32 -1.0, %v560_v50 }
 0x7ed   :  { %564 = vrot.lane.b32.xlu0 %v1421_v32, %s1651_s12 }
 0x845   :  { %v649_v52 = vpop.permute.xlu2 %648 }
 0x846   :  { %v651_v53 = vmul.f32 %v649_v52, %v642_v42 }
 0x848   :  { %653 = vrot.lane.b32.xlu1 %v651_v53, %s1652_s13 }
 0x85f   :  { %v565_v55 = vpop.permute.xlu0 %564 }
 0x860   :  { %v567_v56 = vmul.f32 %v565_v55, %v558_v48 }
 0x862   :  { %569 = vrot.lane.b32.xlu2 %v567_v56, %s1652_s13 }
 0x867   :  { %v146_v9 = vpop.f32.mrf.mxu0 }
 0x868   :  { %v147_v14 = vadd.f32 %v1755_v8, %v146_v9 }
 0x8ba   :  { %v654_v57 = vpop.permute.xlu1 %653 }
 0x8bb   :  { %v1912_v58 = vadd.f32 %v654_v57, %v646_v33 }
 0x8bc   :  { %v570_v59 = vpop.permute.xlu2 %569 }
 0x8bd   :  { %1508 = vtanh.f32 %v1912_v58  ;;  %v1916_v60 = vadd.f32 %v570_v59, %v562_v45 }
 0x8bf   :  { %1510 = vtanh.f32 %v1916_v60 }
 0x8c3   :  { %v1509_v61 = vpop.eup %1508 }
 0x8c4   :  { %659 = vrot.lane.b32.xlu0 %v1509_v61, %s1651_s12 }
 0x8c5   :  { %v1511_v62 = vpop.eup %1510 }
 0x8c6   :  { %575 = vrot.lane.b32.xlu1 %v1511_v62, %s1651_s12 }
 0x936   :  { %v660_v63 = vpop.permute.xlu0 %659 }
 0x937   :  { %v662_v51 = vmul.f32 %v660_v63, %v642_v42 }
 0x938   :  { %v576_v1 = vpop.permute.xlu1 %575 }
 0x939   :  { %v578_v3 = vmul.f32 %v576_v1, %v558_v48  ;;  %728 = vrot.lane.b32.xlu2 %v662_v51, %s1652_s13 }
 0x93b   :  { %664 = vrot.lane.b32.xlu0 %v578_v3, %s1652_s13 }
 0x993   :  { %v729_v4 = vpop.permute.xlu2 %728 }
 0x994   :  { %1429 = vmatmul.msk.f32.vlgmr.msrb.gmra.mxu3 %vm158_vm5, %v729_v4 }
 0x995   :  { %1040 = vmatpush.msrb.mxu3 %v1764_v34 }
 0x997   :  { %1041 = vmatpush.msrb.mxu3 %v1766_v35 }
 0x999   :  { %1042 = vmatpush.msrb.mxu3 %v1779_v38 }
 0x99b   :  { %1043 = vmatpush.msrb.mxu3 %v1788_v40 }
 0x9ad   :  { %v665_v7 = vpop.permute.xlu0 %664 }
 0x9ae   :  { %1426 = vmatmul.msk.f32.vlgmr.msrb.gmra.mxu2 %vm158_vm5, %v665_v7  ;;  %1430 = vmatmul.msk.f32.vlgmr.msra.gmra.mxu1 %vm158_vm5, %v665_v7 }
 0x9af   :  { %976 = vmatpush.msrb.mxu2 %v1713_v0  ;;  %1060 = vmatpush.msra.mxu1 %v1772_v36 }
 0x9b1   :  { %977 = vmatpush.msrb.mxu2 %v1721_v2  ;;  %1061 = vmatpush.msra.mxu1 %v1777_v37 }
 0x9b3   :  { %978 = vmatpush.msrb.mxu2 %v1733_v5  ;;  %1062 = vmatpush.msra.mxu1 %v1786_v39 }
 0x9b5   :  { %979 = vmatpush.msrb.mxu2 %v1741_v6  ;;  %1063 = vmatpush.msra.mxu1 %v1795_v41 }
 0xa17   :  { %v749_v10 = vpop.f32.mrf.mxu3 }
 0xa2b   :  { %v769_v11 = vpop.f32.mrf.mxu1 }
 0xa2c   :  { %v770_v12 = vadd.f32 %v769_v11, %v749_v10 }
 0xa2e   :  { %v772_v13 = vadd.f32 %v1830_v47, %v770_v12 }
 0xa30   :  { %v1431_v15 = vmul.f32 -1.442695, %v772_v13 }
 0xa31   :  { %v685_v16 = vpop.f32.mrf.mxu2 }
 0xa32   :  { %1512 = vpow2.f32 %v1431_v15  ;;  %v688_v17 = vadd.f32 %v685_v16, %v147_v14 }
 0xa34   :  { %v1427_v18 = vmul.f32 -1.442695, %v688_v17 }
 0xa36   :  { %1514 = vpow2.f32 %v1427_v18 }
 0xa38   :  { %v1513_v19 = vpop.eup %1512 }
 0xa39   :  { %v776_v20 = vadd.f32 1.0, %v1513_v19 }
 0xa3b   :  { %1516 = vrcp.f32 %v776_v20  ;;  %v786_v27 = vand.u32 2147483647, %v776_v20  ;;  %v788_v28 = vand.u32 2147483648, %v776_v20  ;;  %vm782_vm2 = vweird.f32 %v776_v20 }
 0xa3c   :  { %v1515_v21 = vpop.eup %1514 }
 0xa3d   :  { %v692_v22 = vadd.f32 1.0, %v1515_v21  ;;  %vm787_vm4 = vcmp.eq.f32.partialorder %v786_v27, 8.507059e+37  ;;  %v789_v43 = vor.u32 1.1754944e-38, %v788_v28 }
 0xa3f   :  { %1518 = vrcp.f32 %v692_v22  ;;  %v704_v44 = vand.u32 2147483648, %v692_v22  ;;  %v702_v49 = vand.u32 2147483647, %v692_v22  ;;  %vm698_vm7 = vweird.f32 %v692_v22 }
 0xa41   :  { %v1517_v23 = vpop.eup %1516  ;;  %v705_v53 = vor.u32 1.1754944e-38, %v704_v44  ;;  %vm703_vm9 = vcmp.eq.f32.partialorder %v702_v49, 8.507059e+37 }
 0xa42   :  { %v778_v24 = vmul.f32 %v1517_v23, %v776_v20  ;;  %vm783_vm1 = vweird.f32 %v1517_v23 }
 0xa43   :  { %vm784_vm3 = vmor %vm782_vm2, %vm783_vm1 }
 0xa44   :  { %v779_v25 = vsub.f32 1.0, %v778_v24 }
 0xa45   :  { %v1519_v26 = vpop.eup %1518 }
 0xa46   :  { %v694_v29 = vmul.f32 %v1519_v26, %v692_v22  ;;  %v780_v30 = vmul.f32 %v1517_v23, %v779_v25  ;;  %vm699_vm6 = vweird.f32 %v1519_v26 }
 0xa47   :  { %vm700_vm8 = vmor %vm698_vm7, %vm699_vm6 }
 0xa48   :  { %v695_v31 = vsub.f32 1.0, %v694_v29  ;;  %v781_v42 = vadd.f32 %v1517_v23, %v780_v30 }
 0xa4a   :  { %v785_v46 = vsel %vm784_vm3, %v1517_v23, %v781_v42  ;;  %v696_v48 = vmul.f32 %v1519_v26, %v695_v31 }
 0xa4b   :  { %v790_v50 = vsel %vm787_vm4, %v789_v43, %v785_v46 }
 0xa4c   :  { %v792_v32 = vmul.f32 2.0, %v790_v50  ;;  %v697_v52 = vadd.f32 %v1519_v26, %v696_v48  ;;  %v794_v4 = vmul.f32 %v790_v50, %v1912_v58  ;;  %v86_v58 = vld [vmem:[%s2073_s0 + $0x28] sm:$0xff] }
 0xa4d   :  { %1401 = vmatmul.msk.f32.gmra.mxu0 %vm92_vm0, %v86_v58 }
 0xa4e   :  { %v1432_v55 = vadd.f32 -1.0, %v792_v32  ;;  %v701_v56 = vsel %vm700_vm8, %v1519_v26, %v697_v52 }
 0xa4f   :  { %v706_v33 = vsel %vm703_vm9, %v705_v53, %v701_v56 }
 0xa50   :  { %796 = vrot.lane.b32.xlu1 %v1432_v55, %s1651_s12  ;;  %v708_v57 = vmul.f32 2.0, %v706_v33  ;;  %v710_v51 = vmul.f32 %v706_v33, %v1916_v60 }
 0xa52   :  { %v1428_v45 = vadd.f32 -1.0, %v708_v57 }
 0xa54   :  { %712 = vrot.lane.b32.xlu2 %v1428_v45, %s1651_s12 }
 0xaae   :  { %v713_v59 = vpop.permute.xlu2 %712 }
 0xaaf   :  { %v715_v61 = vmul.f32 %v713_v59, %v706_v33 }
 0xab1   :  { %717 = vrot.lane.b32.xlu1 %v715_v61, %s1652_s13 }
 0xac2   :  { %v797_v62 = vpop.permute.xlu1 %796 }
 0xac3   :  { %v799_v63 = vmul.f32 %v797_v62, %v790_v50 }
 0xac5   :  { %801 = vrot.lane.b32.xlu0 %v799_v63, %s1652_s13 }
 0xb23   :  { %v718_v1 = vpop.permute.xlu1 %717 }
 0xb24   :  { %v1949_v3 = vadd.f32 %v718_v1, %v710_v51 }
 0xb26   :  { %1520 = vtanh.f32 %v1949_v3 }
 0xb2c   :  { %v1521_v54 = vpop.eup %1520 }
 0xb2d   :  { %723 = vrot.lane.b32.xlu0 %v1521_v54, %s1651_s12 }
 0xb37   :  { %v802_v7 = vpop.permute.xlu0 %801 }
 0xb38   :  { %v1954_v9 = vadd.f32 %v802_v7, %v794_v4 }
 0xb3a   :  { %1522 = vtanh.f32 %v1954_v9 }
 0xb40   :  { %v1523_v10 = vpop.eup %1522 }
 0xb41   :  { %807 = vrot.lane.b32.xlu2 %v1523_v10, %s1651_s12 }
 0xb9b   :  { %v808_v11 = vpop.permute.xlu2 %807 }
 0xb9c   :  { %v810_v60 = vmul.f32 %v808_v11, %v790_v50 }
 0xb9e   :  { %876 = vrot.lane.b32.xlu1 %v810_v60, %s1652_s13 }
 0xb9f   :  { %v724_v12 = vpop.permute.xlu0 %723 }
 0xba0   :  { %v726_v13 = vmul.f32 %v724_v12, %v706_v33 }
 0xba2   :  { %812 = vrot.lane.b32.xlu2 %v726_v13, %s1652_s13 }
 0xbfc   :  { %v813_v14 = vpop.permute.xlu2 %812 }
 0xbfd   :  { %1433 = vmatmul.msk.f32.vlgmr.msra.gmra.mxu2 %vm158_vm5, %v813_v14  ;;  %1437 = vmatmul.msk.f32.vlgmr.msrb.gmra.mxu1 %vm158_vm5, %v813_v14 }
 0xbfe   :  { %1124 = vmatpush.msra.mxu2 %v1713_v0  ;;  %1208 = vmatpush.msrb.mxu1 %v1772_v36  ;;  %v149_v0 = vpop.f32.mrf.mxu0 }
 0xc00   :  { %1125 = vmatpush.msra.mxu2 %v1721_v2  ;;  %1209 = vmatpush.msrb.mxu1 %v1777_v37  ;;  %v150_v2 = vadd.f32 %v1755_v8, %v149_v0 }
 0xc02   :  { %1126 = vmatpush.msra.mxu2 %v1733_v5  ;;  %1210 = vmatpush.msrb.mxu1 %v1786_v39 }
 0xc04   :  { %1127 = vmatpush.msra.mxu2 %v1741_v6  ;;  %1211 = vmatpush.msrb.mxu1 %v1795_v41 }
 0xc10   :  { %v877_v15 = vpop.permute.xlu1 %876 }
 0xc11   :  { %1436 = vmatmul.msk.f32.vlgmr.msra.gmra.mxu3 %vm158_vm5, %v877_v15 }
 0xc12   :  { %1188 = vmatpush.msra.mxu3 %v1764_v34 }
 0xc14   :  { %1189 = vmatpush.msra.mxu3 %v1766_v35 }
 0xc16   :  { %1190 = vmatpush.msra.mxu3 %v1779_v38 }
 0xc18   :  { %1191 = vmatpush.msra.mxu3 %v1788_v40 }
 0xc7a   :  { %v917_v20 = vpop.f32.mrf.mxu1 }
 0xc80   :  { %v833_v5 = vpop.f32.mrf.mxu2 }
 0xc81   :  { %v836_v16 = vadd.f32 %v833_v5, %v150_v2 }
 0xc83   :  { %v1434_v17 = vmul.f32 -1.442695, %v836_v16 }
 0xc85   :  { %1524 = vpow2.f32 %v1434_v17 }
 0xc8b   :  { %v1525_v6 = vpop.eup %1524 }
 0xc8c   :  { %v840_v18 = vadd.f32 1.0, %v1525_v6 }
 0xc8e   :  { %1526 = vrcp.f32 %v840_v18  ;;  %v852_v26 = vand.u32 2147483648, %v840_v18  ;;  %v850_v8 = vand.u32 2147483647, %v840_v18  ;;  %vm846_vm11 = vweird.f32 %v840_v18 }
 0xc90   :  { %v853_v30 = vor.u32 1.1754944e-38, %v852_v26  ;;  %vm851_vm13 = vcmp.eq.f32.partialorder %v850_v8, 8.507059e+37 }
 0xc94   :  { %v1527_v19 = vpop.eup %1526  ;;  %v897_v21 = vpop.f32.mrf.mxu3 }
 0xc95   :  { %v842_v22 = vmul.f32 %v1527_v19, %v840_v18  ;;  %v918_v23 = vadd.f32 %v917_v20, %v897_v21  ;;  %vm847_vm10 = vweird.f32 %v1527_v19 }
 0xc96   :  { %vm848_vm12 = vmor %vm846_vm11, %vm847_vm10 }
 0xc97   :  { %v843_v24 = vsub.f32 1.0, %v842_v22  ;;  %v920_v25 = vadd.f32 %v1830_v47, %v918_v23 }
 0xc99   :  { %v1438_v27 = vmul.f32 -1.442695, %v920_v25  ;;  %v844_v28 = vmul.f32 %v1527_v19, %v843_v24 }
 0xc9b   :  { %1528 = vpow2.f32 %v1438_v27  ;;  %v845_v29 = vadd.f32 %v1527_v19, %v844_v28 }
 0xc9d   :  { %v849_v31 = vsel %vm848_vm12, %v1527_v19, %v845_v29 }
 0xc9e   :  { %v854_v42 = vsel %vm851_vm13, %v853_v30, %v849_v31 }
 0xc9f   :  { %v856_v43 = vmul.f32 2.0, %v854_v42  ;;  %v858_v10 = vmul.f32 %v854_v42, %v1949_v3  ;;  %v87_v3 = vld [vmem:[%s2073_s0 + $0x30] sm:$0xff] }
 0xca0   :  { %1402 = vmatmul.msk.f32.gmra.mxu0 %vm92_vm0, %v87_v3 }
 0xca1   :  { %v1529_v44 = vpop.eup %1528  ;;  %v1435_v46 = vadd.f32 -1.0, %v856_v43 }
 0xca2   :  { %v924_v48 = vadd.f32 1.0, %v1529_v44 }
 0xca3   :  { %860 = vrot.lane.b32.xlu1 %v1435_v46, %s1651_s12 }
 0xca4   :  { %1530 = vrcp.f32 %v924_v48  ;;  %v936_v52 = vand.u32 2147483648, %v924_v48  ;;  %v934_v55 = vand.u32 2147483647, %v924_v48  ;;  %vm930_vm15 = vweird.f32 %v924_v48 }
 0xca6   :  { %v937_v33 = vor.u32 1.1754944e-38, %v936_v52  ;;  %vm935_vm2 = vcmp.eq.f32.partialorder %v934_v55, 8.507059e+37 }
 0xcaa   :  { %v1531_v49 = vpop.eup %1530 }
 0xcab   :  { %v926_v50 = vmul.f32 %v1531_v49, %v924_v48  ;;  %vm931_vm14 = vweird.f32 %v1531_v49 }
 0xcac   :  { %vm932_vm1 = vmor %vm930_vm15, %vm931_vm14 }
 0xcad   :  { %v927_v32 = vsub.f32 1.0, %v926_v50 }
 0xcaf   :  { %v928_v53 = vmul.f32 %v1531_v49, %v927_v32 }
 0xcb1   :  { %v929_v56 = vadd.f32 %v1531_v49, %v928_v53 }
 0xcb3   :  { %v933_v57 = vsel %vm932_vm1, %v1531_v49, %v929_v56 }
 0xcb4   :  { %v938_v45 = vsel %vm935_vm2, %v937_v33, %v933_v57 }
 0xcb5   :  { %v940_v59 = vmul.f32 2.0, %v938_v45  ;;  %v942_v54 = vmul.f32 %v938_v45, %v1954_v9 }
 0xcb7   :  { %v1439_v61 = vadd.f32 -1.0, %v940_v59 }
 0xcb9   :  { %944 = vrot.lane.b32.xlu0 %v1439_v61, %s1651_s12 }
 0xd15   :  { %v861_v62 = vpop.permute.xlu1 %860 }
 0xd16   :  { %v863_v63 = vmul.f32 %v861_v62, %v854_v42 }
 0xd18   :  { %865 = vrot.lane.b32.xlu0 %v863_v63, %s1652_s13 }
 0xd1d   :  { %v152_v5 = vpop.f32.mrf.mxu0 }
 0xd2b   :  { %v945_v51 = vpop.permute.xlu0 %944 }
 0xd2c   :  { %v947_v1 = vmul.f32 %v945_v51, %v938_v45 }
 0xd2e   :  { %949 = vrot.lane.b32.xlu2 %v947_v1, %s1652_s13 }
 0xd88   :  { %v950_v4 = vpop.permute.xlu2 %949 }
 0xd89   :  { %v1986_v7 = vadd.f32 %v950_v4, %v942_v54 }
 0xd8a   :  { %v866_v11 = vpop.permute.xlu0 %865 }
 0xd8b   :  { %1532 = vtanh.f32 %v1986_v7  ;;  %v1990_v60 = vadd.f32 %v866_v11, %v858_v10 }
 0xd8d   :  { %1534 = vtanh.f32 %v1990_v60 }
 0xd91   :  { %v1533_v12 = vpop.eup %1532 }
 0xd92   :  { %955 = vrot.lane.b32.xlu1 %v1533_v12, %s1651_s12 }
 0xd93   :  { %v1535_v13 = vpop.eup %1534 }
 0xd94   :  { %871 = vrot.lane.b32.xlu2 %v1535_v13, %s1651_s12 }
 0xdee   :  { %v872_v58 = vpop.permute.xlu2 %871 }
 0xdef   :  { %v874_v9 = vmul.f32 %v872_v58, %v854_v42 }
 0xdf1   :  { %960 = vrot.lane.b32.xlu1 %v874_v9, %s1652_s13 }
 0xe04   :  { %v956_v14 = vpop.permute.xlu1 %955 }
 0xe05   :  { %v958_v15 = vmul.f32 %v956_v14, %v938_v45 }
 0xe07   :  { %1024 = vrot.lane.b32.xlu0 %v958_v15, %s1652_s13 }
 0xe63   :  { %v961_v0 = vpop.permute.xlu1 %960 }
 0xe64   :  { %1440 = vmatmul.msk.f32.vlgmr.msrb.gmra.mxu2 %vm158_vm5, %v961_v0  ;;  %1444 = vmatmul.msk.f32.vlgmr.msra.gmra.mxu1 %vm158_vm5, %v961_v0 }
 0xe65   :  { %1272 = vmatpush.msrb.mxu2 %v1764_v34  ;;  %v2015_v34 = vld [vmem:[%s2076_s3] ss:$0 sm:$0xff] }
 0xe67   :  { %1273 = vmatpush.msrb.mxu2 %v1766_v35  ;;  %v153_v35 = vadd.f32 %v2015_v34, %v152_v5 }
 0xe69   :  { %1274 = vmatpush.msrb.mxu2 %v1779_v38 }
 0xe6b   :  { %1275 = vmatpush.msrb.mxu2 %v1788_v40 }
 0xe79   :  { %v1025_v2 = vpop.permute.xlu0 %1024 }
 0xe7a   :  { %1443 = vmatmul.msk.f32.vlgmr.msrb.gmra.mxu3 %vm158_vm5, %v1025_v2 }
 0xe7b   :  { %1297 = vmatpush.msrb.mxu3 %v1772_v36 }
 0xe7d   :  { %1298 = vmatpush.msrb.mxu3 %v1777_v37 }
 0xe7f   :  { %1299 = vmatpush.msrb.mxu3 %v1786_v39 }
 0xe81   :  { %1300 = vmatpush.msrb.mxu3 %v1795_v41 }
 0xee1   :  { %v1065_v39 = vpop.f32.mrf.mxu1 }
 0xee7   :  { %v981_v38 = vpop.f32.mrf.mxu2 }
 0xee8   :  { %v984_v40 = vadd.f32 %v981_v38, %v153_v35  ;;  %v2046_v38 = vld [vmem:[%s2079_s6] ss:$0 sm:$0xff] }
 0xeea   :  { %v1441_v16 = vmul.f32 -1.442695, %v984_v40 }
 0xeec   :  { %1536 = vpow2.f32 %v1441_v16 }
 0xef2   :  { %v1537_v17 = vpop.eup %1536 }
 0xef3   :  { %v988_v36 = vadd.f32 1.0, %v1537_v17 }
 0xef5   :  { %1538 = vrcp.f32 %v988_v36  ;;  %v1000_v20 = vand.u32 2147483648, %v988_v36  ;;  %v998_v23 = vand.u32 2147483647, %v988_v36  ;;  %vm994_vm4 = vweird.f32 %v988_v36 }
 0xef7   :  { %v1001_v26 = vor.u32 1.1754944e-38, %v1000_v20  ;;  %vm999_vm7 = vcmp.eq.f32.partialorder %v998_v23, 8.507059e+37 }
 0xefb   :  { %v1539_v37 = vpop.eup %1538 }
 0xefc   :  { %v990_v6 = vmul.f32 %v1539_v37, %v988_v36  ;;  %vm995_vm3 = vweird.f32 %v1539_v37 }
 0xefd   :  { %v1045_v18 = vpop.f32.mrf.mxu3  ;;  %vm996_vm6 = vmor %vm994_vm4, %vm995_vm3 }
 0xefe   :  { %v991_v41 = vsub.f32 1.0, %v990_v6  ;;  %v1066_v19 = vadd.f32 %v1065_v39, %v1045_v18 }
 0xf00   :  { %v1068_v21 = vadd.f32 %v1830_v47, %v1066_v19  ;;  %v992_v22 = vmul.f32 %v1539_v37, %v991_v41 }
 0xf02   :  { %v1445_v24 = vmul.f32 -1.442695, %v1068_v21  ;;  %v993_v25 = vadd.f32 %v1539_v37, %v992_v22 }
 0xf04   :  { %1540 = vpow2.f32 %v1445_v24  ;;  %v997_v27 = vsel %vm996_vm6, %v1539_v37, %v993_v25 }
 0xf05   :  { %v1002_v28 = vsel %vm999_vm7, %v1001_v26, %v997_v27 }
 0xf06   :  { %v1004_v8 = vmul.f32 2.0, %v1002_v28  ;;  %v1006_v59 = vmul.f32 %v1002_v28, %v1990_v60 }
 0xf08   :  { %v1442_v29 = vadd.f32 -1.0, %v1004_v8 }
 0xf0a   :  { %v1541_v30 = vpop.eup %1540  ;;  %1008 = vrot.lane.b32.xlu0 %v1442_v29, %s1651_s12 }
 0xf0b   :  { %v1072_v31 = vadd.f32 1.0, %v1541_v30 }
 0xf0d   :  { %1542 = vrcp.f32 %v1072_v31  ;;  %v1084_v44 = vand.u32 2147483648, %v1072_v31  ;;  %v1082_v48 = vand.u32 2147483647, %v1072_v31  ;;  %vm1078_vm9 = vweird.f32 %v1072_v31 }
 0xf0f   :  { %v1085_v50 = vor.u32 1.1754944e-38, %v1084_v44  ;;  %vm1083_vm11 = vcmp.eq.f32.partialorder %v1082_v48, 8.507059e+37 }
 0xf13   :  { %v1543_v47 = vpop.eup %1542 }
 0xf14   :  { %v1074_v42 = vmul.f32 %v1543_v47, %v1072_v31  ;;  %vm1079_vm8 = vweird.f32 %v1543_v47 }
 0xf15   :  { %vm1080_vm10 = vmor %vm1078_vm9, %vm1079_vm8 }
 0xf16   :  { %v1075_v43 = vsub.f32 1.0, %v1074_v42 }
 0xf18   :  { %v1076_v46 = vmul.f32 %v1543_v47, %v1075_v43 }
 0xf1a   :  { %v1077_v49 = vadd.f32 %v1543_v47, %v1076_v46 }
 0xf1c   :  { %v1081_v32 = vsel %vm1080_vm10, %v1543_v47, %v1077_v49 }
 0xf1d   :  { %v1086_v52 = vsel %vm1083_vm11, %v1085_v50, %v1081_v32 }
 0xf1e   :  { %v1088_v53 = vmul.f32 2.0, %v1086_v52  ;;  %v1090_v51 = vmul.f32 %v1086_v52, %v1986_v7  ;;  %v88_v7 = vld [vmem:[%s2073_s0 + $0x38] sm:$0xff] }
 0xf1f   :  { %1403 = vmatmul.msk.f32.gmra.mxu0 %vm92_vm0, %v88_v7 }
 0xf20   :  { %v1446_v55 = vadd.f32 -1.0, %v1088_v53 }
 0xf22   :  { %1092 = vrot.lane.b32.xlu2 %v1446_v55, %s1651_s12 }
 0xf7c   :  { %v1093_v56 = vpop.permute.xlu2 %1092  ;;  %v1009_v33 = vpop.permute.xlu0 %1008 }
 0xf7d   :  { %v1095_v57 = vmul.f32 %v1093_v56, %v1086_v52  ;;  %v1011_v45 = vmul.f32 %v1009_v33, %v1002_v28 }
 0xf7f   :  { %1097 = vrot.lane.b32.xlu1 %v1095_v57, %s1652_s13  ;;  %1013 = vrot.lane.b32.xlu2 %v1011_v45, %s1652_s13 }
 0xf9c   :  { %v155_v9 = vpop.f32.mrf.mxu0 }
 0xf9d   :  { %v156_v14 = vadd.f32 %v2015_v34, %v155_v9 }
 0xfd9   :  { %v1014_v61 = vpop.permute.xlu2 %1013 }
 0xfda   :  { %v2024_v62 = vadd.f32 %v1014_v61, %v1006_v59 }
 0xfdc   :  { %1544 = vtanh.f32 %v2024_v62 }
 0xfe2   :  { %v1545_v63 = vpop.eup %1544 }
 0xfe3   :  { %1019 = vrot.lane.b32.xlu1 %v1545_v63, %s1651_s12 }
 0xff1   :  { %v1098_v1 = vpop.permute.xlu1 %1097 }
 0xff2   :  { %v2029_v54 = vadd.f32 %v1098_v1, %v1090_v51 }
 0xff4   :  { %1546 = vtanh.f32 %v2029_v54 }
 0xffa   :  { %v1547_v4 = vpop.eup %1546 }
 0xffb   :  { %1103 = vrot.lane.b32.xlu0 %v1547_v4, %s1651_s12 }
0x1055   :  { %v1020_v10 = vpop.permute.xlu1 %1019 }
0x1056   :  { %v1022_v11 = vmul.f32 %v1020_v10, %v1002_v28 }
0x1058   :  { %1108 = vrot.lane.b32.xlu0 %v1022_v11, %s1652_s13 }
0x106d   :  { %v1104_v60 = vpop.permute.xlu0 %1103 }
0x106e   :  { %v1106_v12 = vmul.f32 %v1104_v60, %v1086_v52 }
0x1070   :  { %1172 = vrot.lane.b32.xlu2 %v1106_v12, %s1652_s13 }
0x10ca   :  { %v1173_v13 = vpop.permute.xlu2 %1172  ;;  %v1109_v58 = vpop.permute.xlu0 %1108 }
0x10cb   :  { %1447 = vmatmul.msk.f32.vlgmr.msra.gmra.mxu2 %vm158_vm5, %v1109_v58  ;;  %1450 = vmatmul.msk.f32.vlgmr.msra.gmra.mxu3 %vm158_vm5, %v1173_v13 }
0x10cc   :  { %1451 = vmatmul.msk.f32.vlgmr.msrb.gmra.mxu1 %vm158_vm5, %v1109_v58 }
0x1149   :  { %v1213_v15 = vpop.f32.mrf.mxu1 }
0x114e   :  { %v1129_v3 = vpop.f32.mrf.mxu2  ;;  %v1193_v0 = vpop.f32.mrf.mxu3 }
0x114f   :  { %v1132_v2 = vadd.f32 %v1129_v3, %v156_v14  ;;  %v1214_v5 = vadd.f32 %v1213_v15, %v1193_v0 }
0x1151   :  { %v1448_v35 = vmul.f32 -1.442695, %v1132_v2  ;;  %v1216_v40 = vadd.f32 %v2046_v38, %v1214_v5 }
0x1153   :  { %1548 = vpow2.f32 %v1448_v35  ;;  %v1452_v16 = vmul.f32 -1.442695, %v1216_v40 }
0x1155   :  { %1550 = vpow2.f32 %v1452_v16 }
0x1159   :  { %v1549_v17 = vpop.eup %1548 }
0x115a   :  { %v1136_v36 = vadd.f32 1.0, %v1549_v17 }
0x115b   :  { %v1551_v37 = vpop.eup %1550 }
0x115c   :  { %1552 = vrcp.f32 %v1136_v36  ;;  %v1220_v34 = vadd.f32 1.0, %v1551_v37  ;;  %v1148_v20 = vand.u32 2147483648, %v1136_v36  ;;  %v1146_v23 = vand.u32 2147483647, %v1136_v36 }
0x115d   :  { %vm1142_vm12 = vweird.f32 %v1136_v36 }
0x115e   :  { %1554 = vrcp.f32 %v1220_v34  ;;  %v1232_v24 = vand.u32 2147483648, %v1220_v34  ;;  %v1230_v27 = vand.u32 2147483647, %v1220_v34  ;;  %v1149_v28 = vor.u32 1.1754944e-38, %v1148_v20  ;;  %v1345_v20 = vld [vmem:[#allocation5 + $0x8] sm:$0xff] }
0x115f   :  { %vm1147_vm15 = vcmp.eq.f32.partialorder %v1146_v23, 8.507059e+37  ;;  %vm1226_vm1 = vweird.f32 %v1220_v34 }
0x1160   :  { %v1233_v31 = vor.u32 1.1754944e-38, %v1232_v24  ;;  %vm1231_vm3 = vcmp.eq.f32.partialorder %v1230_v27, 8.507059e+37 }
0x1162   :  { %v1553_v6 = vpop.eup %1552 }
0x1163   :  { %v1138_v39 = vmul.f32 %v1553_v6, %v1136_v36  ;;  %vm1143_vm0 = vweird.f32 %v1553_v6 }
0x1164   :  { %v1555_v18 = vpop.eup %1554  ;;  %vm1144_vm14 = vmor %vm1142_vm12, %vm1143_vm0 }
0x1165   :  { %v1139_v41 = vsub.f32 1.0, %v1138_v39  ;;  %v1222_v19 = vmul.f32 %v1555_v18, %v1220_v34  ;;  %vm1227_vm13 = vweird.f32 %v1555_v18 }
0x1166   :  { %vm1228_vm2 = vmor %vm1226_vm1, %vm1227_vm13 }
0x1167   :  { %v1223_v21 = vsub.f32 1.0, %v1222_v19  ;;  %v1140_v22 = vmul.f32 %v1553_v6, %v1139_v41  ;;  %v1347_v41 = vld [vmem:[#allocation5 + $0x18] sm:$0xff]  ;;  %v1346_v19 = vld [vmem:[#allocation5 + $0x10] sm:$0xff] }
0x1168   :  { %1369 = vmatpush.msrb.mxu0 %v1347_v41 }
0x1169   :  { %v1141_v25 = vadd.f32 %v1553_v6, %v1140_v22  ;;  %v1224_v26 = vmul.f32 %v1555_v18, %v1223_v21  ;;  %v1344_v21 = vld [vmem:[#allocation5] sm:$0xff] }
0x116a   :  { %1370 = vmatpush.msrb.mxu0 %v1346_v19 }
0x116b   :  { %v1145_v8 = vsel %vm1144_vm14, %v1553_v6, %v1141_v25  ;;  %v1225_v29 = vadd.f32 %v1555_v18, %v1224_v26  ;;  %v1469_v25 = vld [vmem:[%s2081_s8] ss:$0 sm:$0xff] }
0x116c   :  { %v1150_v30 = vsel %vm1147_vm15, %v1149_v28, %v1145_v8  ;;  %1371 = vmatpush.msrb.mxu0 %v1345_v20 }
0x116d   :  { %v1152_v47 = vmul.f32 2.0, %v1150_v30  ;;  %v1229_v42 = vsel %vm1228_vm2, %v1555_v18, %v1225_v29  ;;  %v1154_v57 = vmul.f32 %v1150_v30, %v2024_v62 }
0x116e   :  { %v1234_v43 = vsel %vm1231_vm3, %v1233_v31, %v1229_v42  ;;  %1372 = vmatpush.msrb.mxu0 %v1344_v21 }
0x116f   :  { %v1449_v44 = vadd.f32 -1.0, %v1152_v47  ;;  %v1236_v46 = vmul.f32 2.0, %v1234_v43  ;;  %v1238_v53 = vmul.f32 %v1234_v43, %v2029_v54 }
0x1171   :  { %1156 = vrot.lane.b32.xlu1 %v1449_v44, %s1651_s12  ;;  %v1453_v48 = vadd.f32 -1.0, %v1236_v46 }
0x1173   :  { %1240 = vrot.lane.b32.xlu2 %v1453_v48, %s1651_s12 }
0x11cd   :  { %v1241_v49 = vpop.permute.xlu2 %1240 }
0x11ce   :  { %v1243_v50 = vmul.f32 %v1241_v49, %v1234_v43 }
0x11d0   :  { %1245 = vrot.lane.b32.xlu1 %v1243_v50, %s1652_s13 }
0x11e3   :  { %v1157_v32 = vpop.permute.xlu1 %1156 }
0x11e4   :  { %v1159_v52 = vmul.f32 %v1157_v32, %v1150_v30 }
0x11e6   :  { %1161 = vrot.lane.b32.xlu0 %v1159_v52, %s1652_s13 }
0x1242   :  { %v1246_v55 = vpop.permute.xlu1 %1245 }
0x1243   :  { %v1248_v56 = vadd.f32 %v1246_v55, %v1238_v53 }
0x1245   :  { %1556 = vtanh.f32 %v1248_v56 }
0x124b   :  { %v1557_v33 = vpop.eup %1556 }
0x124c   :  { %1251 = vrot.lane.b32.xlu0 %v1557_v33, %s1651_s12 }
0x1258   :  { %v1162_v45 = vpop.permute.xlu0 %1161 }
0x1259   :  { %v1164_v59 = vadd.f32 %v1162_v45, %v1154_v57 }
0x125b   :  { %1558 = vtanh.f32 %v1164_v59 }
0x1261   :  { %v1559_v61 = vpop.eup %1558 }
0x1262   :  { %1167 = vrot.lane.b32.xlu2 %v1559_v61, %s1651_s12 }
0x12bc   :  { %v1168_v63 = vpop.permute.xlu2 %1167 }
0x12bd   :  { %v1170_v51 = vmul.f32 %v1168_v63, %v1150_v30 }
0x12be   :  { %v1252_v1 = vpop.permute.xlu0 %1251 }
0x12bf   :  { %v1254_v4 = vmul.f32 %v1252_v1, %v1234_v43  ;;  %1281 = vrot.lane.b32.xlu2 %v1170_v51, %s1652_s13 }
0x12c1   :  { %1256 = vrot.lane.b32.xlu1 %v1254_v4, %s1652_s13 }
0x1319   :  { %v1282_v54 = vpop.permute.xlu2 %1281 }
0x131a   :  { %1455 = vmatmul.msk.f32.vlgmr.msrb.gmra.mxu3 %vm158_vm5, %v1282_v54 }
0x1333   :  { %v1257_v10 = vpop.permute.xlu1 %1256 }
0x1334   :  { %1454 = vmatmul.msk.f32.vlgmr.msrb.gmra.mxu2 %vm158_vm5, %v1257_v10 }
0x139d   :  { %v1302_v62 = vpop.f32.mrf.mxu3 }
0x13b7   :  { %v1277_v11 = vpop.f32.mrf.mxu2 }
0x13b8   :  { %v1303_v60 = vadd.f32 %v1302_v62, %v1277_v11 }
0x13ba   :  { %v1305_v12 = vadd.f32 %v2046_v38, %v1303_v60 }
0x13bc   :  { %v1456_v7 = vmul.f32 -1.442695, %v1305_v12 }
0x13be   :  { %1560 = vpow2.f32 %v1456_v7 }
0x13c4   :  { %v1561_v13 = vpop.eup %1560 }
0x13c5   :  { %v1309_v58 = vadd.f32 1.0, %v1561_v13 }
0x13c7   :  { %1562 = vrcp.f32 %v1309_v58  ;;  %v1321_v3 = vand.u32 2147483648, %v1309_v58  ;;  %v1319_v2 = vand.u32 2147483647, %v1309_v58  ;;  %vm1315_vm6 = vweird.f32 %v1309_v58 }
0x13c9   :  { %v1322_v35 = vor.u32 1.1754944e-38, %v1321_v3  ;;  %vm1320_vm8 = vcmp.eq.f32.partialorder %v1319_v2, 8.507059e+37 }
0x13cd   :  { %v1563_v9 = vpop.eup %1562 }
0x13ce   :  { %v1311_v14 = vmul.f32 %v1563_v9, %v1309_v58  ;;  %vm1316_vm4 = vweird.f32 %v1563_v9 }
0x13cf   :  { %vm1317_vm7 = vmor %vm1315_vm6, %vm1316_vm4 }
0x13d0   :  { %v1312_v15 = vsub.f32 1.0, %v1311_v14 }
0x13d2   :  { %v1313_v0 = vmul.f32 %v1563_v9, %v1312_v15 }
0x13d4   :  { %v1314_v5 = vadd.f32 %v1563_v9, %v1313_v0 }
0x13d6   :  { %v1318_v40 = vsel %vm1317_vm7, %v1563_v9, %v1314_v5 }
0x13d7   :  { %v1323_v16 = vsel %vm1320_vm8, %v1322_v35, %v1318_v40 }
0x13d8   :  { %v1325_v38 = vmul.f32 2.0, %v1323_v16  ;;  %v1327_v34 = vmul.f32 %v1323_v16, %v1248_v56 }
0x13da   :  { %v1457_v17 = vadd.f32 -1.0, %v1325_v38 }
0x13dc   :  { %1329 = vrot.lane.b32.xlu0 %v1457_v17, %s1651_s12 }
0x144e   :  { %v1330_v36 = vpop.permute.xlu0 %1329 }
0x144f   :  { %v1332_v37 = vmul.f32 %v1330_v36, %v1323_v16 }
0x1451   :  { %1334 = vrot.lane.b32.xlu1 %v1332_v37, %s1652_s13 }
0x14c3   :  { %v1335_v6 = vpop.permute.xlu1 %1334 }
0x14c4   :  { %v1337_v39 = vadd.f32 %v1335_v6, %v1327_v34 }
0x14c6   :  { %1564 = vtanh.f32 %v1337_v39 }
0x14cc   :  { %v1565_v18 = vpop.eup %1564 }
0x14cd   :  { %1340 = vrot.lane.b32.xlu2 %v1565_v18, %s1651_s12  ;;  %s1653_s12 = smov [#allocation7]  }
0x14ce   :  { %s1383_s17 = sshll.u32 %s1653_s12, 4  ;;  %s1384_s17 = int_to_ptr.vmem [resolvable:$true] %s1383_s17 }
0x1527   :  { %v1341_v22 = vpop.permute.xlu2 %1340 }
0x1528   :  { %v1343_v23 = vmul.f32 %v1341_v22, %v1323_v16 }
0x152a   :  { %1353 = vrot.lane.b32.xlu0 %v1343_v23, %s1652_s13 }
0x159c   :  { %v1354_v24 = vpop.permute.xlu0 %1353 }
0x159d   :  { %1458 = vmatmul.msk.f32.vlgmr.msrb.gmra.mxu0 %vm158_vm5, %v1354_v24 }
0x161a   :  { %v1374_v26 = vpop.f32.mrf.mxu0 }
0x161b   :  { %v1375_v27 = vadd.f32 %v1469_v25, %v1374_v26 }
0x161d   :  { %1377 = vst [vmem:[#allocation7] sm:$0xff] %v1375_v27 }
0x161e   :  { %1388 = dma.vmem_to_hbm [thread:$0]  %s1384_s17, 128, %s1386_s20, [#allocation4]  }
0x161f   :  { %1644 = dma.done.wait [#allocation4], 128  }
0x1620   :  { %1645 = vsyncadd [#allocation4], 4294967168 }
0x1621   :  { %1393 = vsyncpa [#allocation3], 1 }
0x1622   :  { %1394 = vsyncpa [#allocation6], 1 }
0x1623   :  { %1395 = vsyncpa [#allocation4], 1 }

</bundles_post_ra>
